<compile_context>
chip_gen: v6e
topology: v6e:2x2x1
jax: 0.10.0
libtpu: 0.0.40
codegen_flags: <defaults>
</compile_context>

<pallas_src>
import functools

import jax
import jax.numpy as jnp
from jax import lax
from jax.experimental import pallas as pl
from jax.experimental.pallas import tpu as pltpu


# ---------------------------------------------------------------------------
# Kernel 1: fused encoder + decoder tanh-RNN over a batch tile.
#   src_ref : (S, TB, E)   embedded source (time-major)
#   tgt_ref : (T, TB, E)   embedded shifted target (time-major)
#   *_wih   : (E, H) bf16, *_whh : (H, H) bf16, *_b : (1, H) f32
# outputs:
#   mem_ref  : (S, TB, H)  encoder memory bank (time-major)
#   dech_ref : (T, TB, H)  decoder RNN hidden states (time-major)
# ---------------------------------------------------------------------------
def _encdec_rnn_kernel(src_ref, tgt_ref, ewih_ref, ewhh_ref, eb_ref,
                       dwih_ref, dwhh_ref, db_ref, mem_ref, dech_ref):
    f32 = jnp.float32
    S = src_ref.shape[0]
    T = tgt_ref.shape[0]
    TB = src_ref.shape[1]
    H = ewhh_ref.shape[0]
    cdt = ewhh_ref.dtype                       # bf16 compute dtype for MXU operands

    src = src_ref[...].astype(f32)             # (S, TB, E)
    tgt = tgt_ref[...].astype(f32)             # (T, TB, E)

    # Hoisted input projections: one MXU-saturating matmul each, computed once
    # outside the recurrence, with the bias folded in here (not per step).
    xw_enc = jnp.einsum('sbe,eh->sbh', src, ewih_ref[...].astype(f32),
                        preferred_element_type=f32) + eb_ref[...]     # (S, TB, H)
    xw_dec = jnp.einsum('tbe,eh->tbh', tgt, dwih_ref[...].astype(f32),
                        preferred_element_type=f32) + db_ref[...]     # (T, TB, H)

    e_whh = ewhh_ref[...]                      # hoisted ref reads (bf16)
    d_whh = dwhh_ref[...]

    # Encoder recurrence: fully (statically) unrolled; only h @ W_hh remains on
    # the serial chain.  h accumulates in f32.
    h = jnp.zeros((TB, H), f32)
    for t in range(S):
        h = jnp.tanh(jnp.dot(h.astype(cdt), e_whh, preferred_element_type=f32)
                     + xw_enc[t])
        mem_ref[t] = h.astype(mem_ref.dtype)

    # Decoder recurrence, initial state = encoder final state (init_state).
    for t in range(T):
        h = jnp.tanh(jnp.dot(h.astype(cdt), d_whh, preferred_element_type=f32)
                     + xw_dec[t])
        dech_ref[t] = h.astype(dech_ref.dtype)


def encdec_rnn_forward(src_emb, tgt_emb, params, *, tb=8):
    S, B, E = src_emb.shape
    T = tgt_emb.shape[0]
    H = params['enc_w_hh'].shape[0]
    assert B % tb == 0, (B, tb)

    emb_spec = lambda L: pl.BlockSpec((L, tb, E), lambda b: (0, b, 0))
    seq_spec = lambda L: pl.BlockSpec((L, tb, H), lambda b: (0, b, 0))
    mat_spec = lambda R: pl.BlockSpec((R, H), lambda b: (0, 0))
    bias_spec = pl.BlockSpec((1, H), lambda b: (0, 0))

    return pl.pallas_call(
        _encdec_rnn_kernel,
        out_shape=(jax.ShapeDtypeStruct((S, B, H), jnp.float32),
                   jax.ShapeDtypeStruct((T, B, H), jnp.float32)),
        grid=(B // tb,),
        in_specs=[emb_spec(S), emb_spec(T),
                  mat_spec(E), mat_spec(H), bias_spec,
                  mat_spec(E), mat_spec(H), bias_spec],
        out_specs=(seq_spec(S), seq_spec(T)),
        compiler_params=pltpu.CompilerParams(
            dimension_semantics=("parallel",),
            vmem_limit_bytes=32 * 1024 * 1024),
    )(src_emb, tgt_emb,
      params['enc_w_ih'], params['enc_w_hh'], params['enc_b'],
      params['dec_w_ih'], params['dec_w_hh'], params['dec_b'])


# ---------------------------------------------------------------------------
# Kernel 2: Luong global attention + fused output projection, per batch element.
# Grid = (B,), "parallel".  Source lengths are scalar-prefetched into SMEM.
#   dech_ref : (T, H)  decoder hidden states of batch b (sliced via BlockSpec)
#   mem_ref  : (S, H)  memory bank of batch b
#   wc_ref   : (2H, H) bf16  stacked [Wc_ctx ; Wc_dec]
#   bc_ref   : (1, H)  f32
# outputs:
#   out_ref  : (T, H)  block of the time-major flat (T, B*H) decoder output
#   attn_ref : (T, S)  block of the batch-leading (B, T, S) attention
# ---------------------------------------------------------------------------
def _attn_kernel(len_ref, dech_ref, mem_ref, wc_ref, bc_ref, out_ref, attn_ref):
    f32 = jnp.float32
    b = pl.program_id(0)
    dec_h = dech_ref[...].astype(f32)                        # (T, H)
    mem = mem_ref[...].astype(f32)                           # (S, H)
    T, _ = dec_h.shape
    S = mem.shape[0]

    # scores[t, s] = <dec_h[t], mem[s]>
    scores = jnp.einsum('th,sh->ts', dec_h, mem, preferred_element_type=f32)

    # mask padded source positions (s >= lengths[b]); length is an SMEM scalar.
    pos = lax.broadcasted_iota(jnp.int32, (T, S), 1)
    scores = jnp.where(pos < len_ref[b], scores, -1e30)

    # numerically-stable softmax; approx reciprocal runs on the otherwise-idle EUP.
    m = jnp.max(scores, axis=-1, keepdims=True)
    e = jnp.exp(scores - m)
    attn = e * pl.reciprocal(jnp.sum(e, axis=-1, keepdims=True), approx=True)
    attn_ref[...] = attn.astype(attn_ref.dtype)

    # context + fused output projection: one (T, 2H) @ (2H, H) MXU push.
    ctx = jnp.dot(attn, mem, preferred_element_type=f32)     # (T, H)
    cat = jnp.concatenate([ctx, dec_h], axis=-1)             # (T, 2H)
    out = jnp.tanh(jnp.dot(cat.astype(wc_ref.dtype), wc_ref[...],
                           preferred_element_type=f32) + bc_ref[...])
    out_ref[...] = out.astype(out_ref.dtype)


def attention_forward(lengths, dec_h_2d, mem_2d, wc, bc, *, T, S, B, H):
    grid_spec = pltpu.PrefetchScalarGridSpec(
        num_scalar_prefetch=1,
        grid=(B,),
        in_specs=[
            pl.BlockSpec((T, H), lambda b, lens: (0, b)),       # dec_h cols of batch b
            pl.BlockSpec((S, H), lambda b, lens: (0, b)),       # memory bank of batch b
            pl.BlockSpec((2 * H, H), lambda b, lens: (0, 0)),   # stacked Wc
            pl.BlockSpec((1, H), lambda b, lens: (0, 0)),       # bias
        ],
        out_specs=[
            pl.BlockSpec((T, H), lambda b, lens: (0, b)),           # time-major flat out
            pl.BlockSpec((None, T, S), lambda b, lens: (b, 0, 0)),  # attn (batch-leading)
        ],
    )
    return pl.pallas_call(
        _attn_kernel,
        out_shape=(jax.ShapeDtypeStruct((T, B * H), jnp.float32),
                   jax.ShapeDtypeStruct((B, T, S), jnp.float32)),
        grid_spec=grid_spec,
        compiler_params=pltpu.CompilerParams(
            dimension_semantics=("parallel",),
            vmem_limit_bytes=32 * 1024 * 1024),
    )(lengths, dec_h_2d, mem_2d, wc, bc)


# ---------------------------------------------------------------------------
# NMTModel.forward equivalent (encoder + decoder glue).
# ---------------------------------------------------------------------------
def nmt_forward(params, src, tgt, lengths, bptt=False, with_align=False):
    """src: (src_len, batch) int32; tgt: (tgt_len, batch) int32; lengths: (batch,)."""
    del bptt, with_align  # init_state is implicit (enc_state feeds the decoder h0)
    # TODO(synk): with_align only applies to transformer decoders; this RNN+attention
    # decoder only returns the "std" attention dict.

    dec_in = tgt[:-1]                                    # (tgt_len-1, batch)

    src_emb = params['src_emb'][src]                     # (S, B, E)  embedding gather (XLA glue)
    tgt_emb = params['tgt_emb'][dec_in]                  # (T, B, E)
    S, B, _ = src_emb.shape
    T = tgt_emb.shape[0]
    H = params['enc_w_hh'].shape[0]

    # Fused encoder + decoder recurrence: one pallas_call, batch-tiled parallel grid.
    memory_bank, dec_h = encdec_rnn_forward(
        src_emb, tgt_emb, params, tb=8 if B % 8 == 0 else B)

    # Free (layout-preserving) reshapes fold batch into the lane dim so the
    # attention kernel consumes the time-major tensors with NO transpose.
    mem_2d = memory_bank.reshape(S, B * H)
    dech_2d = dec_h.reshape(T, B * H)

    dec_out_2d, attn_bts = attention_forward(
        lengths.astype(jnp.int32), dech_2d, mem_2d, params['wc'], params['bc'],
        T=T, S=S, B=B, H=H)

    dec_out = dec_out_2d.reshape(T, B, H)                # already time-major
    attns = {"std": jnp.transpose(attn_bts, (1, 0, 2))}  # (tgt_len-1, batch, src_len)
    return dec_out, attns


# ---------------------------------------------------------------------------
# Deterministic parameter init + example run.
# ---------------------------------------------------------------------------
def init_params(key, vocab=32, emb=128, hidden=128):
    ks = jax.random.split(key, 7)
    s = 0.1
    bf16 = jnp.bfloat16
    return {
        'src_emb': s * jax.random.normal(ks[0], (vocab, emb), jnp.float32),
        'tgt_emb': s * jax.random.normal(ks[1], (vocab, emb), jnp.float32),
        'enc_w_ih': (s * jax.random.normal(ks[2], (emb, hidden), jnp.float32)).astype(bf16),
        'enc_w_hh': (s * jax.random.normal(ks[3], (hidden, hidden), jnp.float32)).astype(bf16),
        'enc_b': jnp.zeros((1, hidden), jnp.float32),
        'dec_w_ih': (s * jax.random.normal(ks[4], (emb, hidden), jnp.float32)).astype(bf16),
        'dec_w_hh': (s * jax.random.normal(ks[5], (hidden, hidden), jnp.float32)).astype(bf16),
        'dec_b': jnp.zeros((1, hidden), jnp.float32),
        # stacked output-projection weight: out = tanh([ctx ; dec_h] @ wc + bc)
        'wc': (s * jax.random.normal(ks[6], (2 * hidden, hidden), jnp.float32)).astype(bf16),
        'bc': jnp.zeros((1, hidden), jnp.float32),
    }


if __name__ == "__main__":
    key = jax.random.PRNGKey(0)
    k_src, k_tgt, k_len, k_par = jax.random.split(key, 4)

    SRC_LEN, TGT_LEN, BATCH = 8, 6, 16          # batch multiple of 8 (sublane tile)
    VOCAB, EMB, HIDDEN = 32, 128, 128           # lane-aligned feature dims

    src = jax.random.randint(k_src, (SRC_LEN, BATCH), 0, VOCAB, dtype=jnp.int32)
    tgt = jax.random.randint(k_tgt, (TGT_LEN, BATCH), 0, VOCAB, dtype=jnp.int32)
    lengths = jax.random.randint(k_len, (BATCH,), 3, SRC_LEN + 1, dtype=jnp.int32)

    params = init_params(k_par, vocab=VOCAB, emb=EMB, hidden=HIDDEN)

    dec_out, attns = jax.jit(functools.partial(nmt_forward, params))(src, tgt, lengths)
    dec_out = jax.block_until_ready(dec_out)
    std_attn = jax.block_until_ready(attns["std"])

    assert dec_out.shape == (TGT_LEN - 1, BATCH, HIDDEN), dec_out.shape
    assert std_attn.shape == (TGT_LEN - 1, BATCH, SRC_LEN), std_attn.shape
    # attention rows sum to 1 (loose tolerance: approx reciprocal in the softmax)
    assert jnp.allclose(jnp.sum(std_attn, axis=-1), 1.0, atol=1e-2)
    # padded source positions carry (numerically) zero attention mass
    valid = jnp.arange(SRC_LEN)[None, None, :] < lengths[None, :, None]
    assert float(jnp.max(jnp.where(valid, 0.0, std_attn))) < 1e-6
    assert bool(jnp.all(jnp.isfinite(dec_out)))

    print("KERNEL_OK")
</pallas_src>

<mosaic_0001>
module attributes {stable_mosaic.version = 11 : i64} {
  func.func @_attn_kernel(%arg0: i32, %arg1: memref<16xi32, #tpu.memory_space<smem>>, %arg2: memref<5x128xf32, #tpu.memory_space<vmem>>, %arg3: memref<8x128xf32, #tpu.memory_space<vmem>>, %arg4: memref<256x128xbf16, #tpu.memory_space<vmem>>, %arg5: memref<1x128xf32, #tpu.memory_space<vmem>>, %arg6: memref<5x128xf32, #tpu.memory_space<vmem>>, %arg7: memref<1x5x8xf32, #tpu.memory_space<vmem>>) attributes {dimension_semantics = [#tpu.dimension_semantics<parallel>], iteration_bounds = array<i64: 16>, scalar_prefetch = 1 : i64, scratch_operands = 0 : i64, tpu.core_type = #tpu.core_type<tc>, window_params = [{transform_indices = @transform_0, window_bounds = array<i64: 5, 128>}, {transform_indices = @transform_1, window_bounds = array<i64: 8, 128>}, {pipeline_mode = #tpu.pipeline_mode<synchronous>, transform_indices = @transform_2, window_bounds = array<i64: 256, 128>}, {pipeline_mode = #tpu.pipeline_mode<synchronous>, transform_indices = @transform_3, window_bounds = array<i64: 1, 128>}, {transform_indices = @transform_4, window_bounds = array<i64: 5, 128>}, {transform_indices = @transform_5, window_bounds = array<i64: 1, 5, 8>}]} {
    %c0 = arith.constant 0 : index
    %c0_0 = arith.constant 0 : index
    %0 = vector.load %arg2[%c0, %c0_0] : memref<5x128xf32, #tpu.memory_space<vmem>>, vector<5x128xf32>
    %c0_1 = arith.constant 0 : index
    %c0_2 = arith.constant 0 : index
    %1 = vector.load %arg3[%c0_1, %c0_2] : memref<8x128xf32, #tpu.memory_space<vmem>>, vector<8x128xf32>
    "tpu.trace_start"() <{level = 10 : i32, message = "th,sh->ts"}> : () -> ()
    %cst = arith.constant dense<0.000000e+00> : vector<5x8xf32>
    %2 = tpu.matmul %0, %1, %cst {dimension_numbers = #tpu.dot_dimension_numbers<[1], [1], [0], [0], [0, 0, 1, 0], [], []>} : vector<5x128xf32>, vector<8x128xf32>, vector<5x8xf32> -> vector<5x8xf32>
    "tpu.trace_stop"() : () -> ()
    %3 = tpu.iota {dimensions = array<i32: 1>} : vector<5x8xi32>
    %4 = arith.index_cast %arg0 : i32 to index
    %5 = memref.load %arg1[%4] : memref<16xi32, #tpu.memory_space<smem>>
    %6 = vector.broadcast %5 : i32 to vector<5x8xi32>
    %7 = arith.cmpi slt, %3, %6 : vector<5x8xi32>
    %cst_3 = arith.constant -1.000000e+30 : f32
    %8 = vector.broadcast %cst_3 : f32 to vector<5x8xf32>
    %9 = arith.select %7, %2, %8 : vector<5x8xi1>, vector<5x8xf32>
    %cst_4 = arith.constant dense<0xFF800000> : vector<5xf32>
    %10 = vector.multi_reduction <maximumf>, %9, %cst_4 [1] : vector<5x8xf32> to vector<5xf32>
    %11 = vector.shape_cast %10 : vector<5xf32> to vector<5x1xf32>
    %12 = vector.broadcast %11 : vector<5x1xf32> to vector<5x8xf32>
    %13 = arith.subf %9, %12 : vector<5x8xf32>
    %14 = math.exp %13 : vector<5x8xf32>
    %cst_5 = arith.constant dense<0.000000e+00> : vector<5xf32>
    %15 = vector.multi_reduction <add>, %14, %cst_5 [1] : vector<5x8xf32> to vector<5xf32>
    %16 = vector.shape_cast %15 : vector<5xf32> to vector<5x1xf32>
    %17 = tpu.reciprocal %16 {approx = true} : vector<5x1xf32> -> vector<5x1xf32>
    %18 = vector.broadcast %17 : vector<5x1xf32> to vector<5x8xf32>
    %19 = arith.mulf %14, %18 : vector<5x8xf32>
    %c0_6 = arith.constant 0 : index
    %c0_7 = arith.constant 0 : index
    %c0_8 = arith.constant 0 : index
    %20 = vector.load %arg7[%c0_6, %c0_7, %c0_8] : memref<1x5x8xf32, #tpu.memory_space<vmem>>, vector<1x5x8xf32>
    %21 = vector.shape_cast %20 : vector<1x5x8xf32> to vector<5x8xf32>
    %22 = vector.shape_cast %19 : vector<5x8xf32> to vector<1x5x8xf32>
    tpu.vector_store %arg7[%c0_6, %c0_7, %c0_8], %22 {strides = array<i32>} : memref<1x5x8xf32, #tpu.memory_space<vmem>>, vector<1x5x8xf32>,
    %cst_9 = arith.constant dense<0.000000e+00> : vector<5x128xf32>
    %23 = tpu.matmul %19, %1, %cst_9 {dimension_numbers = #tpu.dot_dimension_numbers<[1], [0], [0], [1], [0, 0, 1, 1], [], []>} : vector<5x8xf32>, vector<8x128xf32>, vector<5x128xf32> -> vector<5x128xf32>
    %24 = tpu.concatenate %23, %0 in 1 : vector<5x128xf32>, vector<5x128xf32> -> vector<5x256xf32>
    %25 = arith.truncf %24 : vector<5x256xf32> to vector<5x256xbf16>
    %c0_10 = arith.constant 0 : index
    %c0_11 = arith.constant 0 : index
    %26 = vector.load %arg4[%c0_10, %c0_11] : memref<256x128xbf16, #tpu.memory_space<vmem>>, vector<256x128xbf16>
    %cst_12 = arith.constant dense<0.000000e+00> : vector<5x128xf32>
    %27 = tpu.matmul %25, %26, %cst_12 {dimension_numbers = #tpu.dot_dimension_numbers<[1], [0], [0], [1], [0, 0, 1, 1], [], []>} : vector<5x256xbf16>, vector<256x128xbf16>, vector<5x128xf32> -> vector<5x128xf32>
    %c0_13 = arith.constant 0 : index
    %c0_14 = arith.constant 0 : index
    %28 = vector.load %arg5[%c0_13, %c0_14] : memref<1x128xf32, #tpu.memory_space<vmem>>, vector<1x128xf32>
    %29 = vector.broadcast %28 : vector<1x128xf32> to vector<5x128xf32>
    %30 = arith.addf %27, %29 : vector<5x128xf32>
    %31 = math.tanh %30 : vector<5x128xf32>
    %c0_15 = arith.constant 0 : index
    %c0_16 = arith.constant 0 : index
    %32 = vector.load %arg6[%c0_15, %c0_16] : memref<5x128xf32, #tpu.memory_space<vmem>>, vector<5x128xf32>
    tpu.vector_store %arg6[%c0_15, %c0_16], %31 {strides = array<i32>} : memref<5x128xf32, #tpu.memory_space<vmem>>, vector<5x128xf32>,
    return
  }
  func.func @transform_0(%arg0: i32, %arg1: memref<16xi32, #tpu.memory_space<smem>>) -> (i32, i32) {
    %c0_i32 = arith.constant 0 : i32
    %c0_i32_0 = arith.constant 0 : i32
    return %c0_i32, %arg0 : i32, i32
  }
  func.func @transform_1(%arg0: i32, %arg1: memref<16xi32, #tpu.memory_space<smem>>) -> (i32, i32) {
    %c0_i32 = arith.constant 0 : i32
    %c0_i32_0 = arith.constant 0 : i32
    return %c0_i32, %arg0 : i32, i32
  }
  func.func @transform_2(%arg0: i32, %arg1: memref<16xi32, #tpu.memory_space<smem>>) -> (i32, i32) {
    %c0_i32 = arith.constant 0 : i32
    %c0_i32_0 = arith.constant 0 : i32
    %c0_i32_1 = arith.constant 0 : i32
    return %c0_i32, %c0_i32_0 : i32, i32
  }
  func.func @transform_3(%arg0: i32, %arg1: memref<16xi32, #tpu.memory_space<smem>>) -> (i32, i32) {
    %c0_i32 = arith.constant 0 : i32
    %c0_i32_0 = arith.constant 0 : i32
    %c0_i32_1 = arith.constant 0 : i32
    return %c0_i32, %c0_i32_0 : i32, i32
  }
  func.func @transform_4(%arg0: i32, %arg1: memref<16xi32, #tpu.memory_space<smem>>) -> (i32, i32) {
    %c0_i32 = arith.constant 0 : i32
    %c0_i32_0 = arith.constant 0 : i32
    return %c0_i32, %arg0 : i32, i32
  }
  func.func @transform_5(%arg0: i32, %arg1: memref<16xi32, #tpu.memory_space<smem>>) -> (i32, i32, i32) {
    %c0_i32 = arith.constant 0 : i32
    %c0_i32_0 = arith.constant 0 : i32
    %c0_i32_1 = arith.constant 0 : i32
    return %arg0, %c0_i32, %c0_i32_0 : i32, i32, i32
  }
}

module attributes {stable_mosaic.version = 11 : i64} {
  func.func @_encdec_rnn_kernel(%arg0: i32, %arg1: memref<8x8x128xf32, #tpu.memory_space<vmem>>, %arg2: memref<5x8x128xf32, #tpu.memory_space<vmem>>, %arg3: memref<128x128xbf16, #tpu.memory_space<vmem>>, %arg4: memref<128x128xbf16, #tpu.memory_space<vmem>>, %arg5: memref<1x128xf32, #tpu.memory_space<vmem>>, %arg6: memref<128x128xbf16, #tpu.memory_space<vmem>>, %arg7: memref<128x128xbf16, #tpu.memory_space<vmem>>, %arg8: memref<1x128xf32, #tpu.memory_space<vmem>>, %arg9: memref<8x8x128xf32, #tpu.memory_space<vmem>>, %arg10: memref<5x8x128xf32, #tpu.memory_space<vmem>>) attributes {dimension_semantics = [#tpu.dimension_semantics<parallel>], iteration_bounds = array<i64: 2>, scalar_prefetch = 0 : i64, scratch_operands = 0 : i64, tpu.core_type = #tpu.core_type<tc>, window_params = [{transform_indices = @transform_0, window_bounds = array<i64: 8, 8, 128>}, {transform_indices = @transform_1, window_bounds = array<i64: 5, 8, 128>}, {pipeline_mode = #tpu.pipeline_mode<synchronous>, transform_indices = @transform_2, window_bounds = array<i64: 128, 128>}, {pipeline_mode = #tpu.pipeline_mode<synchronous>, transform_indices = @transform_3, window_bounds = array<i64: 128, 128>}, {pipeline_mode = #tpu.pipeline_mode<synchronous>, transform_indices = @transform_4, window_bounds = array<i64: 1, 128>}, {pipeline_mode = #tpu.pipeline_mode<synchronous>, transform_indices = @transform_5, window_bounds = array<i64: 128, 128>}, {pipeline_mode = #tpu.pipeline_mode<synchronous>, transform_indices = @transform_6, window_bounds = array<i64: 128, 128>}, {pipeline_mode = #tpu.pipeline_mode<synchronous>, transform_indices = @transform_7, window_bounds = array<i64: 1, 128>}, {transform_indices = @transform_8, window_bounds = array<i64: 8, 8, 128>}, {transform_indices = @transform_9, window_bounds = array<i64: 5, 8, 128>}]} {
    %c0 = arith.constant 0 : index
    %c0_0 = arith.constant 0 : index
    %c0_1 = arith.constant 0 : index
    %0 = vector.load %arg1[%c0, %c0_0, %c0_1] : memref<8x8x128xf32, #tpu.memory_space<vmem>>, vector<8x8x128xf32>
    %c0_2 = arith.constant 0 : index
    %c0_3 = arith.constant 0 : index
    %c0_4 = arith.constant 0 : index
    %1 = vector.load %arg2[%c0_2, %c0_3, %c0_4] : memref<5x8x128xf32, #tpu.memory_space<vmem>>, vector<5x8x128xf32>
    %c0_5 = arith.constant 0 : index
    %c0_6 = arith.constant 0 : index
    %2 = vector.load %arg3[%c0_5, %c0_6] : memref<128x128xbf16, #tpu.memory_space<vmem>>, vector<128x128xbf16>
    %3 = arith.extf %2 : vector<128x128xbf16> to vector<128x128xf32>
    "tpu.trace_start"() <{level = 10 : i32, message = "sbe,eh->sbh"}> : () -> ()
    %cst = arith.constant dense<0.000000e+00> : vector<8x8x128xf32>
    %4 = tpu.matmul %0, %3, %cst {dimension_numbers = #tpu.dot_dimension_numbers<[2], [0], [0, 1], [1], [0, 0, 0, 1, 1, 1], [], []>} : vector<8x8x128xf32>, vector<128x128xf32>, vector<8x8x128xf32> -> vector<8x8x128xf32>
    "tpu.trace_stop"() : () -> ()
    %c0_7 = arith.constant 0 : index
    %c0_8 = arith.constant 0 : index
    %5 = vector.load %arg5[%c0_7, %c0_8] : memref<1x128xf32, #tpu.memory_space<vmem>>, vector<1x128xf32>
    %6 = vector.shape_cast %5 : vector<1x128xf32> to vector<1x1x128xf32>
    %7 = vector.broadcast %6 : vector<1x1x128xf32> to vector<8x8x128xf32>
    %8 = arith.addf %4, %7 : vector<8x8x128xf32>
    %c0_9 = arith.constant 0 : index
    %c0_10 = arith.constant 0 : index
    %9 = vector.load %arg6[%c0_9, %c0_10] : memref<128x128xbf16, #tpu.memory_space<vmem>>, vector<128x128xbf16>
    %10 = arith.extf %9 : vector<128x128xbf16> to vector<128x128xf32>
    "tpu.trace_start"() <{level = 10 : i32, message = "tbe,eh->tbh"}> : () -> ()
    %cst_11 = arith.constant dense<0.000000e+00> : vector<5x8x128xf32>
    %11 = tpu.matmul %1, %10, %cst_11 {dimension_numbers = #tpu.dot_dimension_numbers<[2], [0], [0, 1], [1], [0, 0, 0, 1, 1, 1], [], []>} : vector<5x8x128xf32>, vector<128x128xf32>, vector<5x8x128xf32> -> vector<5x8x128xf32>
    "tpu.trace_stop"() : () -> ()
    %c0_12 = arith.constant 0 : index
    %c0_13 = arith.constant 0 : index
    %12 = vector.load %arg8[%c0_12, %c0_13] : memref<1x128xf32, #tpu.memory_space<vmem>>, vector<1x128xf32>
    %13 = vector.shape_cast %12 : vector<1x128xf32> to vector<1x1x128xf32>
    %14 = vector.broadcast %13 : vector<1x1x128xf32> to vector<5x8x128xf32>
    %15 = arith.addf %11, %14 : vector<5x8x128xf32>
    %c0_14 = arith.constant 0 : index
    %c0_15 = arith.constant 0 : index
    %16 = vector.load %arg4[%c0_14, %c0_15] : memref<128x128xbf16, #tpu.memory_space<vmem>>, vector<128x128xbf16>
    %c0_16 = arith.constant 0 : index
    %c0_17 = arith.constant 0 : index
    %17 = vector.load %arg7[%c0_16, %c0_17] : memref<128x128xbf16, #tpu.memory_space<vmem>>, vector<128x128xbf16>
    %cst_18 = arith.constant 0.000000e+00 : f32
    %18 = vector.broadcast %cst_18 : f32 to vector<8x128xf32>
    %19 = arith.truncf %18 : vector<8x128xf32> to vector<8x128xbf16>
    %cst_19 = arith.constant dense<0.000000e+00> : vector<8x128xf32>
    %20 = tpu.matmul %19, %16, %cst_19 {dimension_numbers = #tpu.dot_dimension_numbers<[1], [0], [0], [1], [0, 0, 1, 1], [], []>} : vector<8x128xbf16>, vector<128x128xbf16>, vector<8x128xf32> -> vector<8x128xf32>
    %21 = vector.extract_strided_slice %8 {offsets = [0, 0, 0], sizes = [1, 8, 128], strides = [1, 1, 1]} : vector<8x8x128xf32> to vector<1x8x128xf32>
    %22 = vector.shape_cast %21 : vector<1x8x128xf32> to vector<8x128xf32>
    %23 = arith.addf %20, %22 : vector<8x128xf32>
    %24 = math.tanh %23 : vector<8x128xf32>
    %c0_20 = arith.constant 0 : index
    %c0_21 = arith.constant 0 : index
    %c0_22 = arith.constant 0 : index
    %25 = vector.load %arg9[%c0_20, %c0_21, %c0_22] : memref<8x8x128xf32, #tpu.memory_space<vmem>>, vector<1x8x128xf32>
    %26 = vector.shape_cast %25 : vector<1x8x128xf32> to vector<8x128xf32>
    %27 = vector.shape_cast %24 : vector<8x128xf32> to vector<1x8x128xf32>
    tpu.vector_store %arg9[%c0_20, %c0_21, %c0_22], %27 {strides = array<i32>} : memref<8x8x128xf32, #tpu.memory_space<vmem>>, vector<1x8x128xf32>,
    %28 = arith.truncf %24 : vector<8x128xf32> to vector<8x128xbf16>
    %cst_23 = arith.constant dense<0.000000e+00> : vector<8x128xf32>
    %29 = tpu.matmul %28, %16, %cst_23 {dimension_numbers = #tpu.dot_dimension_numbers<[1], [0], [0], [1], [0, 0, 1, 1], [], []>} : vector<8x128xbf16>, vector<128x128xbf16>, vector<8x128xf32> -> vector<8x128xf32>
    %30 = vector.extract_strided_slice %8 {offsets = [1, 0, 0], sizes = [1, 8, 128], strides = [1, 1, 1]} : vector<8x8x128xf32> to vector<1x8x128xf32>
    %31 = vector.shape_cast %30 : vector<1x8x128xf32> to vector<8x128xf32>
    %32 = arith.addf %29, %31 : vector<8x128xf32>
    %33 = math.tanh %32 : vector<8x128xf32>
    %c1 = arith.constant 1 : index
    %c0_24 = arith.constant 0 : index
    %c0_25 = arith.constant 0 : index
    %34 = vector.load %arg9[%c1, %c0_24, %c0_25] : memref<8x8x128xf32, #tpu.memory_space<vmem>>, vector<1x8x128xf32>
    %35 = vector.shape_cast %34 : vector<1x8x128xf32> to vector<8x128xf32>
    %36 = vector.shape_cast %33 : vector<8x128xf32> to vector<1x8x128xf32>
    tpu.vector_store %arg9[%c1, %c0_24, %c0_25], %36 {strides = array<i32>} : memref<8x8x128xf32, #tpu.memory_space<vmem>>, vector<1x8x128xf32>,
    %37 = arith.truncf %33 : vector<8x128xf32> to vector<8x128xbf16>
    %cst_26 = arith.constant dense<0.000000e+00> : vector<8x128xf32>
    %38 = tpu.matmul %37, %16, %cst_26 {dimension_numbers = #tpu.dot_dimension_numbers<[1], [0], [0], [1], [0, 0, 1, 1], [], []>} : vector<8x128xbf16>, vector<128x128xbf16>, vector<8x128xf32> -> vector<8x128xf32>
    %39 = vector.extract_strided_slice %8 {offsets = [2, 0, 0], sizes = [1, 8, 128], strides = [1, 1, 1]} : vector<8x8x128xf32> to vector<1x8x128xf32>
    %40 = vector.shape_cast %39 : vector<1x8x128xf32> to vector<8x128xf32>
    %41 = arith.addf %38, %40 : vector<8x128xf32>
    %42 = math.tanh %41 : vector<8x128xf32>
    %c2 = arith.constant 2 : index
    %c0_27 = arith.constant 0 : index
    %c0_28 = arith.constant 0 : index
    %43 = vector.load %arg9[%c2, %c0_27, %c0_28] : memref<8x8x128xf32, #tpu.memory_space<vmem>>, vector<1x8x128xf32>
    %44 = vector.shape_cast %43 : vector<1x8x128xf32> to vector<8x128xf32>
    %45 = vector.shape_cast %42 : vector<8x128xf32> to vector<1x8x128xf32>
    tpu.vector_store %arg9[%c2, %c0_27, %c0_28], %45 {strides = array<i32>} : memref<8x8x128xf32, #tpu.memory_space<vmem>>, vector<1x8x128xf32>,
    %46 = arith.truncf %42 : vector<8x128xf32> to vector<8x128xbf16>
    %cst_29 = arith.constant dense<0.000000e+00> : vector<8x128xf32>
    %47 = tpu.matmul %46, %16, %cst_29 {dimension_numbers = #tpu.dot_dimension_numbers<[1], [0], [0], [1], [0, 0, 1, 1], [], []>} : vector<8x128xbf16>, vector<128x128xbf16>, vector<8x128xf32> -> vector<8x128xf32>
    %48 = vector.extract_strided_slice %8 {offsets = [3, 0, 0], sizes = [1, 8, 128], strides = [1, 1, 1]} : vector<8x8x128xf32> to vector<1x8x128xf32>
    %49 = vector.shape_cast %48 : vector<1x8x128xf32> to vector<8x128xf32>
    %50 = arith.addf %47, %49 : vector<8x128xf32>
    %51 = math.tanh %50 : vector<8x128xf32>
    %c3 = arith.constant 3 : index
    %c0_30 = arith.constant 0 : index
    %c0_31 = arith.constant 0 : index
    %52 = vector.load %arg9[%c3, %c0_30, %c0_31] : memref<8x8x128xf32, #tpu.memory_space<vmem>>, vector<1x8x128xf32>
    %53 = vector.shape_cast %52 : vector<1x8x128xf32> to vector<8x128xf32>
    %54 = vector.shape_cast %51 : vector<8x128xf32> to vector<1x8x128xf32>
    tpu.vector_store %arg9[%c3, %c0_30, %c0_31], %54 {strides = array<i32>} : memref<8x8x128xf32, #tpu.memory_space<vmem>>, vector<1x8x128xf32>,
    %55 = arith.truncf %51 : vector<8x128xf32> to vector<8x128xbf16>
    %cst_32 = arith.constant dense<0.000000e+00> : vector<8x128xf32>
    %56 = tpu.matmul %55, %16, %cst_32 {dimension_numbers = #tpu.dot_dimension_numbers<[1], [0], [0], [1], [0, 0, 1, 1], [], []>} : vector<8x128xbf16>, vector<128x128xbf16>, vector<8x128xf32> -> vector<8x128xf32>
    %57 = vector.extract_strided_slice %8 {offsets = [4, 0, 0], sizes = [1, 8, 128], strides = [1, 1, 1]} : vector<8x8x128xf32> to vector<1x8x128xf32>
    %58 = vector.shape_cast %57 : vector<1x8x128xf32> to vector<8x128xf32>
    %59 = arith.addf %56, %58 : vector<8x128xf32>
    %60 = math.tanh %59 : vector<8x128xf32>
    %c4 = arith.constant 4 : index
    %c0_33 = arith.constant 0 : index
    %c0_34 = arith.constant 0 : index
    %61 = vector.load %arg9[%c4, %c0_33, %c0_34] : memref<8x8x128xf32, #tpu.memory_space<vmem>>, vector<1x8x128xf32>
    %62 = vector.shape_cast %61 : vector<1x8x128xf32> to vector<8x128xf32>
    %63 = vector.shape_cast %60 : vector<8x128xf32> to vector<1x8x128xf32>
    tpu.vector_store %arg9[%c4, %c0_33, %c0_34], %63 {strides = array<i32>} : memref<8x8x128xf32, #tpu.memory_space<vmem>>, vector<1x8x128xf32>,
    %64 = arith.truncf %60 : vector<8x128xf32> to vector<8x128xbf16>
    %cst_35 = arith.constant dense<0.000000e+00> : vector<8x128xf32>
    %65 = tpu.matmul %64, %16, %cst_35 {dimension_numbers = #tpu.dot_dimension_numbers<[1], [0], [0], [1], [0, 0, 1, 1], [], []>} : vector<8x128xbf16>, vector<128x128xbf16>, vector<8x128xf32> -> vector<8x128xf32>
    %66 = vector.extract_strided_slice %8 {offsets = [5, 0, 0], sizes = [1, 8, 128], strides = [1, 1, 1]} : vector<8x8x128xf32> to vector<1x8x128xf32>
    %67 = vector.shape_cast %66 : vector<1x8x128xf32> to vector<8x128xf32>
    %68 = arith.addf %65, %67 : vector<8x128xf32>
    %69 = math.tanh %68 : vector<8x128xf32>
    %c5 = arith.constant 5 : index
    %c0_36 = arith.constant 0 : index
    %c0_37 = arith.constant 0 : index
    %70 = vector.load %arg9[%c5, %c0_36, %c0_37] : memref<8x8x128xf32, #tpu.memory_space<vmem>>, vector<1x8x128xf32>
    %71 = vector.shape_cast %70 : vector<1x8x128xf32> to vector<8x128xf32>
    %72 = vector.shape_cast %69 : vector<8x128xf32> to vector<1x8x128xf32>
    tpu.vector_store %arg9[%c5, %c0_36, %c0_37], %72 {strides = array<i32>} : memref<8x8x128xf32, #tpu.memory_space<vmem>>, vector<1x8x128xf32>,
    %73 = arith.truncf %69 : vector<8x128xf32> to vector<8x128xbf16>
    %cst_38 = arith.constant dense<0.000000e+00> : vector<8x128xf32>
    %74 = tpu.matmul %73, %16, %cst_38 {dimension_numbers = #tpu.dot_dimension_numbers<[1], [0], [0], [1], [0, 0, 1, 1], [], []>} : vector<8x128xbf16>, vector<128x128xbf16>, vector<8x128xf32> -> vector<8x128xf32>
    %75 = vector.extract_strided_slice %8 {offsets = [6, 0, 0], sizes = [1, 8, 128], strides = [1, 1, 1]} : vector<8x8x128xf32> to vector<1x8x128xf32>
    %76 = vector.shape_cast %75 : vector<1x8x128xf32> to vector<8x128xf32>
    %77 = arith.addf %74, %76 : vector<8x128xf32>
    %78 = math.tanh %77 : vector<8x128xf32>
    %c6 = arith.constant 6 : index
    %c0_39 = arith.constant 0 : index
    %c0_40 = arith.constant 0 : index
    %79 = vector.load %arg9[%c6, %c0_39, %c0_40] : memref<8x8x128xf32, #tpu.memory_space<vmem>>, vector<1x8x128xf32>
    %80 = vector.shape_cast %79 : vector<1x8x128xf32> to vector<8x128xf32>
    %81 = vector.shape_cast %78 : vector<8x128xf32> to vector<1x8x128xf32>
    tpu.vector_store %arg9[%c6, %c0_39, %c0_40], %81 {strides = array<i32>} : memref<8x8x128xf32, #tpu.memory_space<vmem>>, vector<1x8x128xf32>,
    %82 = arith.truncf %78 : vector<8x128xf32> to vector<8x128xbf16>
    %cst_41 = arith.constant dense<0.000000e+00> : vector<8x128xf32>
    %83 = tpu.matmul %82, %16, %cst_41 {dimension_numbers = #tpu.dot_dimension_numbers<[1], [0], [0], [1], [0, 0, 1, 1], [], []>} : vector<8x128xbf16>, vector<128x128xbf16>, vector<8x128xf32> -> vector<8x128xf32>
    %84 = vector.extract_strided_slice %8 {offsets = [7, 0, 0], sizes = [1, 8, 128], strides = [1, 1, 1]} : vector<8x8x128xf32> to vector<1x8x128xf32>
    %85 = vector.shape_cast %84 : vector<1x8x128xf32> to vector<8x128xf32>
    %86 = arith.addf %83, %85 : vector<8x128xf32>
    %87 = math.tanh %86 : vector<8x128xf32>
    %c7 = arith.constant 7 : index
    %c0_42 = arith.constant 0 : index
    %c0_43 = arith.constant 0 : index
    %88 = vector.load %arg9[%c7, %c0_42, %c0_43] : memref<8x8x128xf32, #tpu.memory_space<vmem>>, vector<1x8x128xf32>
    %89 = vector.shape_cast %88 : vector<1x8x128xf32> to vector<8x128xf32>
    %90 = vector.shape_cast %87 : vector<8x128xf32> to vector<1x8x128xf32>
    tpu.vector_store %arg9[%c7, %c0_42, %c0_43], %90 {strides = array<i32>} : memref<8x8x128xf32, #tpu.memory_space<vmem>>, vector<1x8x128xf32>,
    %91 = arith.truncf %87 : vector<8x128xf32> to vector<8x128xbf16>
    %cst_44 = arith.constant dense<0.000000e+00> : vector<8x128xf32>
    %92 = tpu.matmul %91, %17, %cst_44 {dimension_numbers = #tpu.dot_dimension_numbers<[1], [0], [0], [1], [0, 0, 1, 1], [], []>} : vector<8x128xbf16>, vector<128x128xbf16>, vector<8x128xf32> -> vector<8x128xf32>
    %93 = vector.extract_strided_slice %15 {offsets = [0, 0, 0], sizes = [1, 8, 128], strides = [1, 1, 1]} : vector<5x8x128xf32> to vector<1x8x128xf32>
    %94 = vector.shape_cast %93 : vector<1x8x128xf32> to vector<8x128xf32>
    %95 = arith.addf %92, %94 : vector<8x128xf32>
    %96 = math.tanh %95 : vector<8x128xf32>
    %c0_45 = arith.constant 0 : index
    %c0_46 = arith.constant 0 : index
    %c0_47 = arith.constant 0 : index
    %97 = vector.load %arg10[%c0_45, %c0_46, %c0_47] : memref<5x8x128xf32, #tpu.memory_space<vmem>>, vector<1x8x128xf32>
    %98 = vector.shape_cast %97 : vector<1x8x128xf32> to vector<8x128xf32>
    %99 = vector.shape_cast %96 : vector<8x128xf32> to vector<1x8x128xf32>
    tpu.vector_store %arg10[%c0_45, %c0_46, %c0_47], %99 {strides = array<i32>} : memref<5x8x128xf32, #tpu.memory_space<vmem>>, vector<1x8x128xf32>,
    %100 = arith.truncf %96 : vector<8x128xf32> to vector<8x128xbf16>
    %cst_48 = arith.constant dense<0.000000e+00> : vector<8x128xf32>
    %101 = tpu.matmul %100, %17, %cst_48 {dimension_numbers = #tpu.dot_dimension_numbers<[1], [0], [0], [1], [0, 0, 1, 1], [], []>} : vector<8x128xbf16>, vector<128x128xbf16>, vector<8x128xf32> -> vector<8x128xf32>
    %102 = vector.extract_strided_slice %15 {offsets = [1, 0, 0], sizes = [1, 8, 128], strides = [1, 1, 1]} : vector<5x8x128xf32> to vector<1x8x128xf32>
    %103 = vector.shape_cast %102 : vector<1x8x128xf32> to vector<8x128xf32>
    %104 = arith.addf %101, %103 : vector<8x128xf32>
    %105 = math.tanh %104 : vector<8x128xf32>
    %c1_49 = arith.constant 1 : index
    %c0_50 = arith.constant 0 : index
    %c0_51 = arith.constant 0 : index
    %106 = vector.load %arg10[%c1_49, %c0_50, %c0_51] : memref<5x8x128xf32, #tpu.memory_space<vmem>>, vector<1x8x128xf32>
    %107 = vector.shape_cast %106 : vector<1x8x128xf32> to vector<8x128xf32>
    %108 = vector.shape_cast %105 : vector<8x128xf32> to vector<1x8x128xf32>
    tpu.vector_store %arg10[%c1_49, %c0_50, %c0_51], %108 {strides = array<i32>} : memref<5x8x128xf32, #tpu.memory_space<vmem>>, vector<1x8x128xf32>,
    %109 = arith.truncf %105 : vector<8x128xf32> to vector<8x128xbf16>
    %cst_52 = arith.constant dense<0.000000e+00> : vector<8x128xf32>
    %110 = tpu.matmul %109, %17, %cst_52 {dimension_numbers = #tpu.dot_dimension_numbers<[1], [0], [0], [1], [0, 0, 1, 1], [], []>} : vector<8x128xbf16>, vector<128x128xbf16>, vector<8x128xf32> -> vector<8x128xf32>
    %111 = vector.extract_strided_slice %15 {offsets = [2, 0, 0], sizes = [1, 8, 128], strides = [1, 1, 1]} : vector<5x8x128xf32> to vector<1x8x128xf32>
    %112 = vector.shape_cast %111 : vector<1x8x128xf32> to vector<8x128xf32>
    %113 = arith.addf %110, %112 : vector<8x128xf32>
    %114 = math.tanh %113 : vector<8x128xf32>
    %c2_53 = arith.constant 2 : index
    %c0_54 = arith.constant 0 : index
    %c0_55 = arith.constant 0 : index
    %115 = vector.load %arg10[%c2_53, %c0_54, %c0_55] : memref<5x8x128xf32, #tpu.memory_space<vmem>>, vector<1x8x128xf32>
    %116 = vector.shape_cast %115 : vector<1x8x128xf32> to vector<8x128xf32>
    %117 = vector.shape_cast %114 : vector<8x128xf32> to vector<1x8x128xf32>
    tpu.vector_store %arg10[%c2_53, %c0_54, %c0_55], %117 {strides = array<i32>} : memref<5x8x128xf32, #tpu.memory_space<vmem>>, vector<1x8x128xf32>,
    %118 = arith.truncf %114 : vector<8x128xf32> to vector<8x128xbf16>
    %cst_56 = arith.constant dense<0.000000e+00> : vector<8x128xf32>
    %119 = tpu.matmul %118, %17, %cst_56 {dimension_numbers = #tpu.dot_dimension_numbers<[1], [0], [0], [1], [0, 0, 1, 1], [], []>} : vector<8x128xbf16>, vector<128x128xbf16>, vector<8x128xf32> -> vector<8x128xf32>
    %120 = vector.extract_strided_slice %15 {offsets = [3, 0, 0], sizes = [1, 8, 128], strides = [1, 1, 1]} : vector<5x8x128xf32> to vector<1x8x128xf32>
    %121 = vector.shape_cast %120 : vector<1x8x128xf32> to vector<8x128xf32>
    %122 = arith.addf %119, %121 : vector<8x128xf32>
    %123 = math.tanh %122 : vector<8x128xf32>
    %c3_57 = arith.constant 3 : index
    %c0_58 = arith.constant 0 : index
    %c0_59 = arith.constant 0 : index
    %124 = vector.load %arg10[%c3_57, %c0_58, %c0_59] : memref<5x8x128xf32, #tpu.memory_space<vmem>>, vector<1x8x128xf32>
    %125 = vector.shape_cast %124 : vector<1x8x128xf32> to vector<8x128xf32>
    %126 = vector.shape_cast %123 : vector<8x128xf32> to vector<1x8x128xf32>
    tpu.vector_store %arg10[%c3_57, %c0_58, %c0_59], %126 {strides = array<i32>} : memref<5x8x128xf32, #tpu.memory_space<vmem>>, vector<1x8x128xf32>,
    %127 = arith.truncf %123 : vector<8x128xf32> to vector<8x128xbf16>
    %cst_60 = arith.constant dense<0.000000e+00> : vector<8x128xf32>
    %128 = tpu.matmul %127, %17, %cst_60 {dimension_numbers = #tpu.dot_dimension_numbers<[1], [0], [0], [1], [0, 0, 1, 1], [], []>} : vector<8x128xbf16>, vector<128x128xbf16>, vector<8x128xf32> -> vector<8x128xf32>
    %129 = vector.extract_strided_slice %15 {offsets = [4, 0, 0], sizes = [1, 8, 128], strides = [1, 1, 1]} : vector<5x8x128xf32> to vector<1x8x128xf32>
    %130 = vector.shape_cast %129 : vector<1x8x128xf32> to vector<8x128xf32>
    %131 = arith.addf %128, %130 : vector<8x128xf32>
    %132 = math.tanh %131 : vector<8x128xf32>
    %c4_61 = arith.constant 4 : index
    %c0_62 = arith.constant 0 : index
    %c0_63 = arith.constant 0 : index
    %133 = vector.load %arg10[%c4_61, %c0_62, %c0_63] : memref<5x8x128xf32, #tpu.memory_space<vmem>>, vector<1x8x128xf32>
    %134 = vector.shape_cast %133 : vector<1x8x128xf32> to vector<8x128xf32>
    %135 = vector.shape_cast %132 : vector<8x128xf32> to vector<1x8x128xf32>
    tpu.vector_store %arg10[%c4_61, %c0_62, %c0_63], %135 {strides = array<i32>} : memref<5x8x128xf32, #tpu.memory_space<vmem>>, vector<1x8x128xf32>,
    return
  }
  func.func @transform_0(%arg0: i32) -> (i32, i32, i32) {
    %c0_i32 = arith.constant 0 : i32
    %c0_i32_0 = arith.constant 0 : i32
    %c0_i32_1 = arith.constant 0 : i32
    return %c0_i32, %arg0, %c0_i32_0 : i32, i32, i32
  }
  func.func @transform_1(%arg0: i32) -> (i32, i32, i32) {
    %c0_i32 = arith.constant 0 : i32
    %c0_i32_0 = arith.constant 0 : i32
    %c0_i32_1 = arith.constant 0 : i32
    return %c0_i32, %arg0, %c0_i32_0 : i32, i32, i32
  }
  func.func @transform_2(%arg0: i32) -> (i32, i32) {
    %c0_i32 = arith.constant 0 : i32
    %c0_i32_0 = arith.constant 0 : i32
    %c0_i32_1 = arith.constant 0 : i32
    return %c0_i32, %c0_i32_0 : i32, i32
  }
  func.func @transform_3(%arg0: i32) -> (i32, i32) {
    %c0_i32 = arith.constant 0 : i32
    %c0_i32_0 = arith.constant 0 : i32
    %c0_i32_1 = arith.constant 0 : i32
    return %c0_i32, %c0_i32_0 : i32, i32
  }
  func.func @transform_4(%arg0: i32) -> (i32, i32) {
    %c0_i32 = arith.constant 0 : i32
    %c0_i32_0 = arith.constant 0 : i32
    %c0_i32_1 = arith.constant 0 : i32
    return %c0_i32, %c0_i32_0 : i32, i32
  }
  func.func @transform_5(%arg0: i32) -> (i32, i32) {
    %c0_i32 = arith.constant 0 : i32
    %c0_i32_0 = arith.constant 0 : i32
    %c0_i32_1 = arith.constant 0 : i32
    return %c0_i32, %c0_i32_0 : i32, i32
  }
  func.func @transform_6(%arg0: i32) -> (i32, i32) {
    %c0_i32 = arith.constant 0 : i32
    %c0_i32_0 = arith.constant 0 : i32
    %c0_i32_1 = arith.constant 0 : i32
    return %c0_i32, %c0_i32_0 : i32, i32
  }
  func.func @transform_7(%arg0: i32) -> (i32, i32) {
    %c0_i32 = arith.constant 0 : i32
    %c0_i32_0 = arith.constant 0 : i32
    %c0_i32_1 = arith.constant 0 : i32
    return %c0_i32, %c0_i32_0 : i32, i32
  }
  func.func @transform_8(%arg0: i32) -> (i32, i32, i32) {
    %c0_i32 = arith.constant 0 : i32
    %c0_i32_0 = arith.constant 0 : i32
    %c0_i32_1 = arith.constant 0 : i32
    return %c0_i32, %arg0, %c0_i32_0 : i32, i32, i32
  }
  func.func @transform_9(%arg0: i32) -> (i32, i32, i32) {
    %c0_i32 = arith.constant 0 : i32
    %c0_i32_0 = arith.constant 0 : i32
    %c0_i32_1 = arith.constant 0 : i32
    return %c0_i32, %arg0, %c0_i32_0 : i32, i32, i32
  }
}

</mosaic_0001>

<bundles_post_ra>
// kernel: nmt_forward.3
= control target key start
LH: loop header
LB: loop body
LE: loop exit
PB: predicated region body
PF: predicated region fallthrough
CT: control target
= control target key end

     0   :  { %s945_s0 = inlined_call_operand.vmem [shape: s32[16], index: 0, kind: input, shape index: {}]   ;;  %s946_s1 = inlined_call_operand.vmem [shape: f32[5,2048], index: 1, kind: input, shape index: {}]   ;;  %s947_s2 = inlined_call_operand.vmem [shape: f32[8,2048], index: 2, kind: input, shape index: {}]   ;;  %s948_s3 = inlined_call_operand.vmem [shape: bf16[256,128], index: 3, kind: input, shape index: {}]   ;;  %s949_s4 = inlined_call_operand.vmem [shape: f32[1,128], index: 4, kind: input, shape index: {}]   ;;  %s950_s5 = inlined_call_operand.vmem [shape: f32[5,2048], index: 5, kind: output, shape index: {0}]   ;;  %s951_s6 = inlined_call_operand.vmem [shape: f32[16,5,8], index: 6, kind: output, shape index: {1}]  }
   0x1   :  { %s12_s23 = sshll.u32 %s945_s0, 4  ;;  %s13_s23 = int_to_ptr.vmem [resolvable:$true] %s12_s23 }
   0x2   :  { %s794_s24 = scalar_lea.vmem %s13_s23, 16  ;;  %p799_p1 = scmp.lt.s32.totalorder %s13_s23, %s13_s23 }
   0x3   :  { %p795_p0 = scmp.ne.s32.totalorder %s13_s23, %s794_s24  ;;  %p800_p2 = scmp.lt.s32.totalorder %s794_s24, %s794_s24 }
   0x5   :  { %p801_p3 = por %p800_p2, %p799_p1 }
   0x7   :  { %p802_p4 = pnand %p801_p3, %p795_p0 }
   0x9   :  { %805 = shalt.err (!%p802_p4)  }
   0xa   :  { %s816_s25 = smov [#allocation3]  }
   0xb   :  { %15 = dma.vmem_to_smem %s13_s23, 16, %s816_s25, [#allocation2] }
   0xc   :  { %810 = dma.done.wait [#allocation2], 16 }
   0xd   :  { %811 = vsyncadd [#allocation2], 4294967280 }
   0xe   :  { %17 = sfence }
   0xf   :  { %s857_s26 = smov 0  }
  0x10 LB: > { %s696_s0 = sadd.s32 4294967295, %s814_s26   ;;  %p700_p5 = scmp.ge.s32.totalorder %s814_s26, 1  ;;  %s814_s26 = sphi %s857_s26, %s23_s26  }
  0x11   : > { %p205_p6 = scmp.lt.s32.totalorder %s814_s26, 17 }
  0x13   : > { %p206_p7 = pnand %p700_p5, %p205_p6 }
  0x14   : > { %p239_p8 = scmp.lt.s32.totalorder (!%p206_p7), %s696_s0, 15  ;;  %s330_s11 = sld [smem:[#allocation3 + %s696_s0]] (!%p206_p7) }
  0x15   : > { %209 = sbr.rel (%p206_p7) target bundleno = 949 (0x3b5), region = 36 }
  0x1a   : > { %v817_v0 = vmov 0.0   ;;  %vm818_vm0 = vmmov 0   ;;  %s240_s27 = scalar_select %p239_p8, %s696_s0, 15  ;;  %v328_v3 = vlaneseq  ;;  %v331_v5 = vstv %s330_s11  ;;  %v772_v15 = vld [vmem:[%s948_s3 + $0x78] sm:$0xff]   ;;  %v774_v17 = vld [vmem:[%s948_s3 + $0x70] sm:$0xff]   ;;  %v776_v19 = vld [vmem:[%s948_s3 + $0x68] sm:$0xff]  }
  0x1b   : > { %751 = vmatprep.subr.mxu0 %v817_v0  ;;  %753 = vmatprep.mubr.msk.f32.mxu0 %vm818_vm0, %v817_v0  ;;  %vm334_vm2 = vcmask 61440   ;;  %v773_v16 = vld [vmem:[%s948_s3 + $0x38] sm:$0xff]   ;;  %v775_v18 = vld [vmem:[%s948_s3 + $0x30] sm:$0xff]   ;;  %v777_v20 = vld [vmem:[%s948_s3 + $0x28] sm:$0xff]   ;;  %vm347_vm3 = vcmask 64512  }
  0x1c   : > { %s865_s28 = sshll.u32 %s240_s27, 3  ;;  %v329_v4 = vand.u32 127, %v328_v3  ;;  %729 = vmatprep.subr.bf16.mxu1 %v772_v15  ;;  %v778_v21 = vld [vmem:[%s948_s3 + $0x60] sm:$0xff]   ;;  %v780_v23 = vld [vmem:[%s948_s3 + $0x58] sm:$0xff]   ;;  %v782_v25 = vld [vmem:[%s948_s3 + $0x50] sm:$0xff]  }
  0x1d   : > { %s246_s7 = scalar_lea.vmem %s947_s2, %s865_s28  ;;  %s242_s10 = scalar_lea.vmem %s946_s1, %s865_s28  ;;  %730 = vmatpush3.bf16.msra.mxu1 %v773_v16  ;;  %v779_v22 = vld [vmem:[%s948_s3 + $0x20] sm:$0xff]   ;;  %v781_v24 = vld [vmem:[%s948_s3 + $0x18] sm:$0xff]   ;;  %v783_v26 = vld [vmem:[%s948_s3 + $0x10] sm:$0xff]  }
  0x1e   : > { %v257_v1 = vld [vmem:[%s246_s7] sm:$0xff]  ;;  %vm332_vm1 = vcmp.lt.s32.totalorder %v329_v4, %v331_v5  ;;  %731 = vmatprep.subr.bf16.mxu1 %v774_v17  ;;  %v784_v27 = vld [vmem:[%s948_s3 + $0x48] sm:$0xff]   ;;  %s254_s21 = scalar_lea.vmem %s951_s6, %s865_s28  ;;  %s250_s29 = scalar_lea.vmem %s950_s5, %s865_s28 }
  0x1f   : > { %752 = vmatpush3.xpose.msra.mxu0 %v257_v1  ;;  %v875_v2 = vld [vmem:[%s242_s10] sm:$0x1f]  ;;  %v785_v28 = vld [vmem:[%s948_s3 + $0x8] sm:$0xff]  }
  0x20   : > { %756 = vmatprep.subr.mxu0 %v817_v0  ;;  %v786_v29 = vld [vmem:[%s948_s3 + $0x40] sm:$0xff]   ;;  %v422_v34 = vpack.c.bf16 %v875_v2, %v875_v2 }
  0x21   : > { %732 = vmatpush3.bf16.msra.mxu1 %v775_v18  ;;  %v787_v33 = vld [vmem:[%s948_s3] sm:$0xff]  }
  0x22   : > { %754 = vmatmul.mubr.f32.vlgmr.msra.gmra.mxu0 %v875_v2  ;;  %733 = vmatprep.subr.bf16.mxu1 %v776_v19  ;;  %v706_v39 = vld [vmem:[%s949_s4] ss:$0 sm:$0xff] }
  0x23   : > { %757 = vmatpush3.msra.mxu0 %v257_v1  ;;  %758 = vmatprep.mubr.msk.f32.mxu0 %vm818_vm0, %v817_v0 }
  0x24   : > { %590 = vmatprep.mubr.bf16.mxu1 %v422_v34 }
  0x25   : > { %734 = vmatpush3.bf16.msra.mxu1 %v777_v20 }
  0x26   : > { %735 = vmatprep.subr.bf16.mxu1 %v778_v21 }
  0x29   : > { %736 = vmatpush3.bf16.msra.mxu1 %v779_v22 }
  0x2a   : > { %737 = vmatprep.subr.bf16.mxu1 %v780_v23 }
  0x2d   : > { %738 = vmatpush3.bf16.msra.mxu1 %v781_v24 }
  0x2e   : > { %739 = vmatprep.subr.bf16.mxu1 %v782_v25 }
  0x31   : > { %740 = vmatpush3.bf16.msra.mxu1 %v783_v26 }
  0x32   : > { %741 = vmatprep.subr.bf16.mxu1 %v784_v27 }
  0x35   : > { %742 = vmatpush3.bf16.msra.mxu1 %v785_v28 }
  0x36   : > { %743 = vmatprep.subr.bf16.mxu1 %v786_v29 }
  0x39   : > { %744 = vmatpush3.bf16.msra.mxu1 %v787_v33 }
  0xe2   : > { %v324_v6 = vpop.f32.mrf.mxu0 }
  0xe3   : > { %v333_v7 = vsel %vm332_vm1, %v324_v6, -1e+30 }
  0xe4   : > { %v755_v8 = vpop.f32.mrf.mxu0  ;;  %v335_v9 = vsel %vm334_vm2, %v333_v7, -inf }
  0xe5   : > { %336 = vmax.xlane.f32.xlu0 %v335_v9 }
 0x16e   : > { %v337_v10 = vpop.xlane.xlu0 %336 }
 0x16f   : > { %v338_v11 = vsub.f32 %v333_v7, %v337_v10 }
 0x171   : > { %v339_v12 = vmul.f32 1.442695, %v338_v11 }
 0x173   : > { %788 = vpow2.f32 %v339_v12 }
 0x180   : > { %v789_v13 = vpop.eup %788 }
 0x181   : > { %v341_v14 = vsel %vm334_vm2, %v789_v13, 0.0 }
 0x182   : > { %342 = vadd.xlane.f32.xlu0 %v341_v14 }
 0x20b   : > { %v343_v30 = vpop.xlane.xlu0 %342 }
 0x20c   : > { %790 = vrcp.f32 %v343_v30 }
 0x219   : > { %v791_v31 = vpop.eup %790 }
 0x21a   : > { %v345_v32 = vmul.f32 %v791_v31, %v789_v13 }
 0x21c   : > { %346 = vst.msk [vmem:[%s254_s21] sm:$0x1f] %vm334_vm2, %v345_v32  ;;  %759 = vmatmul.mubr.msk.f32.vlgmr.msra.gmra.mxu0 %vm347_vm3, %v345_v32 }
 0x2dc   : > { %v417_v35 = vpop.f32.mrf.mxu0 }
 0x2dd   : > { %v421_v36 = vpack.c.bf16 %v417_v35, %v417_v35 }
 0x2de   : > { %v760_v37 = vpop.f32.mrf.mxu0 }
 0x2df   : > { %591 = vmatmul.mubr.bf16.vlgmr.msra.gmra.mxu1 %v421_v36 }
 0x39f   : > { %v745_v38 = vpop.f32.mrf.mxu1 }
 0x3a1   : > { %v746_v40 = vpop.f32.mrf.mxu1 }
 0x3a2   : > { %v747_v41 = vadd.f32 %v746_v40, %v745_v38 }
 0x3a3   : > { %v748_v42 = vpop.f32.mrf.mxu1 }
 0x3a4   : > { %v593_v43 = vadd.f32 %v747_v41, %v706_v39 }
 0x3a5   : > { %v749_v44 = vpop.f32.mrf.mxu1 }
 0x3a6   : > { %792 = vtanh.f32 %v593_v43 }
 0x3b3   : > { %v793_v45 = vpop.eup %792 }
 0x3b4   : > { %599 = vst [vmem:[%s250_s29] sm:$0x1f] %v793_v45 }
 0x3b5 PF: > { %s23_s26 = sadd.s32 1, %s814_s26  }
 0x3b6   : > { %p20_p9 = scmp.ge.s32.totalorder %s23_s26, 18  }
 0x3b8   :  { %22 = sbr.rel (!%p20_p9) target bundleno = 16 (0x10), region = 81 }

// kernel: nmt_forward.2
= control target key start
LH: loop header
LB: loop body
LE: loop exit
PB: predicated region body
PF: predicated region fallthrough
CT: control target
= control target key end

     0   :  { %s2465_s30 = smov 0   ;;  %s2467_s10 = smov 0   ;;  %s3034_s0 = inlined_call_operand.vmem [shape: f32[8,16,128], index: 0, kind: input, shape index: {}]   ;;  %s3035_s1 = inlined_call_operand.vmem [shape: f32[5,16,128], index: 1, kind: input, shape index: {}]   ;;  %s3036_s2 = inlined_call_operand.vmem [shape: bf16[128,128], index: 2, kind: input, shape index: {}]   ;;  %s3037_s3 = inlined_call_operand.vmem [shape: bf16[128,128], index: 3, kind: input, shape index: {}]   ;;  %s3038_s4 = inlined_call_operand.vmem [shape: f32[1,128], index: 4, kind: input, shape index: {}, may-alias: {4,7}]   ;;  %s3039_s5 = inlined_call_operand.vmem [shape: bf16[128,128], index: 5, kind: input, shape index: {}]   ;;  %s3040_s6 = inlined_call_operand.vmem [shape: bf16[128,128], index: 6, kind: input, shape index: {}]   ;;  %s3041_s7 = inlined_call_operand.vmem [shape: f32[1,128], index: 7, kind: input, shape index: {}, may-alias: {4,7}]   ;;  %s3042_s8 = inlined_call_operand.vmem [shape: f32[8,16,128], index: 8, kind: output, shape index: {0}]   ;;  %s3043_s9 = inlined_call_operand.vmem [shape: f32[5,16,128], index: 9, kind: output, shape index: {1}]  }
   0x1   :  { %s2469_s11 = smov 0  }
   0x2 LB: > { %s2481_s12 = sadd.s32 4294967295, %s2410_s11   ;;  %s2484_s13 = sadd.s32 1, %s2410_s11   ;;  %s2410_s11 = sphi %s2469_s11, %s3048_s11   ;;  %s2406_s10 = sphi %s2467_s10, %s3047_s10   ;;  %s2402_s30 = sphi %s2465_s30, %s3046_s30  }
   0x3   : > { %s24_s14 = ssub.s32 %s2410_s11, %s2484_s13  ;;  %s27_s15 = sadd.s32 1, %s2406_s10 }
   0x4   : > { %p25_p0 = scmp.eq.s32.totalorder %s24_s14, 0  ;;  %p34_p1 = scmp.ne.s32.totalorder %s2406_s10, %s2402_s30 }
   0x5   : > { %p35_p2 = scmp.eq.s32.totalorder %s2410_s11, 0  ;;  %p216_p3 = scmp.eq.s32.totalorder %s2481_s12, 1 }
   0x6   : > { %s2494_s16 = scalar_select %p25_p0, %s2406_s10, %s27_s15  }
   0x7   : > { %p2496_p4 = por %p35_p2, %p34_p1  ;;  %p2500_p5 = por %p216_p3, %p34_p1 }
   0x8   : > { %p1685_p6 = scmp.ge.s32.totalorder %s2410_s11, 2 }
   0xa   : > { %282 = sbr.rel (%p1685_p6) target bundleno = 30 (0x1e), region = 40 }
   0xf   : > { %285 = sbr.rel (!%p2496_p4) target bundleno = 23 (0x17), region = 44  ;;  %s287_s19 = sand.u32 (%p2496_p4), 1, %s2406_s10  }
  0x10   : > { %s1687_s20 = sshll.u32 (%p2496_p4), %s2410_s11, 3  ;;  %s1686_s21 = sshll.u32 (%p2496_p4), %s287_s19, 6 }
  0x11   : > { %s291_s24 = scalar_lea.vmem (%p2496_p4), %s3034_s0, %s1687_s20  ;;  %s289_s25 = scalar_lea.vmem (%p2496_p4), [#allocation2], %s1686_s21 }
  0x12   : > { %v334_v0 = vld [vmem:[%s291_s24] sm:$0xff] (%p2496_p4)  ;;  %v336_v1 = vld [vmem:[%s291_s24 + $0x10] sm:$0xff] (%p2496_p4) }
  0x13   : > { %v338_v2 = vld [vmem:[%s291_s24 + $0x20] sm:$0xff] (%p2496_p4)  ;;  %335 = vst [vmem:[%s289_s25] sm:$0xff] (%p2496_p4), %v334_v0  ;;  %337 = vst [vmem:[%s289_s25 + $0x8] sm:$0xff] (%p2496_p4), %v336_v1  ;;  %v340_v3 = vld [vmem:[%s291_s24 + $0x30] sm:$0xff] (%p2496_p4) }
  0x14   : > { %339 = vst [vmem:[%s289_s25 + $0x10] sm:$0xff] %v338_v2  ;;  %v342_v4 = vld [vmem:[%s291_s24 + $0x40] sm:$0xff]  ;;  %v344_v5 = vld [vmem:[%s291_s24 + $0x50] sm:$0xff]  ;;  %341 = vst [vmem:[%s289_s25 + $0x18] sm:$0xff] %v340_v3 }
  0x15   : > { %343 = vst [vmem:[%s289_s25 + $0x20] sm:$0xff] %v342_v4  ;;  %345 = vst [vmem:[%s289_s25 + $0x28] sm:$0xff] %v344_v5  ;;  %v346_v6 = vld [vmem:[%s291_s24 + $0x60] sm:$0xff]  ;;  %v348_v7 = vld [vmem:[%s291_s24 + $0x70] sm:$0xff] }
  0x16   : > { %347 = vst [vmem:[%s289_s25 + $0x30] sm:$0xff] %v346_v6  ;;  %349 = vst [vmem:[%s289_s25 + $0x38] sm:$0xff] %v348_v7 }
  0x17 PF: > { %355 = sbr.rel (!%p2496_p4) target bundleno = 30 (0x1e), region = 82  ;;  %s357_s26 = sand.u32 (%p2496_p4), 1, %s2406_s10  }
  0x18   : > { %s1688_s27 = sshll.u32 (%p2496_p4), %s2410_s11, 3  ;;  %s2317_s28 = smul.u32 (%p2496_p4), 40, %s357_s26 }
  0x19   : > { %s361_s15 = scalar_lea.vmem (%p2496_p4), %s3035_s1, %s1688_s27 }
  0x1a   : > { %v398_v8 = vld [vmem:[%s361_s15] sm:$0xff] (%p2496_p4)  ;;  %v400_v9 = vld [vmem:[%s361_s15 + $0x10] sm:$0xff] (%p2496_p4)  ;;  %s359_s19 = scalar_lea.vmem (%p2496_p4), [#allocation3], %s2317_s28 }
  0x1b   : > { %v402_v10 = vld [vmem:[%s361_s15 + $0x20] sm:$0xff] (%p2496_p4)  ;;  %v404_v11 = vld [vmem:[%s361_s15 + $0x30] sm:$0xff] (%p2496_p4)  ;;  %399 = vst [vmem:[%s359_s19] sm:$0xff] (%p2496_p4), %v398_v8  ;;  %401 = vst [vmem:[%s359_s19 + $0x8] sm:$0xff] (%p2496_p4), %v400_v9 }
  0x1c   : > { %v406_v12 = vld [vmem:[%s361_s15 + $0x40] sm:$0xff]  ;;  %403 = vst [vmem:[%s359_s19 + $0x10] sm:$0xff] %v402_v10  ;;  %405 = vst [vmem:[%s359_s19 + $0x18] sm:$0xff] %v404_v11 }
  0x1d   : > { %407 = vst [vmem:[%s359_s19 + $0x20] sm:$0xff] %v406_v12 }
  0x1e PF: > { %p1689_p7 = scmp.ge.s32.totalorder %s2410_s11, 1  ;;  %p412_p8 = scmp.lt.s32.totalorder %s2410_s11, 3 }
  0x20   : > { %p413_p9 = pnand %p1689_p7, %p412_p8 }
  0x21   : > { %s419_s23 = sand.u32 (!%p413_p9), 1, %s2402_s30  }
  0x22   : > { %416 = sbr.rel (%p413_p9) target bundleno = 2856 (0xb28), region = 120  ;;  %s2530_s24 = sshll.u32 (!%p413_p9), %s419_s23, 6 }
  0x23   : > { %s2536_s11 = scalar_lea.vmem (!%p413_p9), [#allocation2], %s2530_s24  ;;  %s2682_s19 = smul.u32 (!%p413_p9), 40, %s419_s23 }
  0x24   : > { %s2732_s17 = scalar_lea.vmem (!%p413_p9), [#allocation4], %s2530_s24 }
  0x25   : > { %s2954_s25 = scalar_lea.vmem (!%p413_p9), [#allocation5], %s2682_s19 }
  0x27   : > { %v1796_v13 = vld [vmem:[%s3036_s2 + $0x38] sm:$0xff]   ;;  %v1795_v14 = vld [vmem:[%s3036_s2 + $0x30] sm:$0xff]   ;;  %v2412_v17 = vmov 0.0   ;;  %vm2413_vm0 = vmmov 0   ;;  %v469_v19 = vld [vmem:[%s2536_s11] sm:$0xff]  ;;  %v2414_v1 = vmov 0  }
  0x28   : > { %v1756_v15 = vunpack.c.l.bf16 %v1796_v13  ;;  %v1757_v16 = vunpack.c.h.bf16 %v1796_v13  ;;  %2010 = vmatprep.subr.mxu1 %v2412_v17  ;;  %2042 = vmatprep.mubr.msk.f32.mxu1 %vm2413_vm0, %v2412_v17  ;;  %v1753_v18 = vunpack.c.h.bf16 %v1795_v14  ;;  %v1794_v20 = vld [vmem:[%s3036_s2 + $0x28] sm:$0xff]   ;;  %v1752_v21 = vunpack.c.l.bf16 %v1795_v14  ;;  %v1793_v23 = vld [vmem:[%s3036_s2 + $0x20] sm:$0xff]   ;;  %v1792_v26 = vld [vmem:[%s3036_s2 + $0x18] sm:$0xff]  }
  0x29   : > { %1998 = vmatprep.mubr.f32.mxu0 %v469_v19  ;;  %v1749_v22 = vunpack.c.h.bf16 %v1794_v20  ;;  %v1748_v24 = vunpack.c.l.bf16 %v1794_v20  ;;  %v1745_v25 = vunpack.c.h.bf16 %v1793_v23  ;;  %v1744_v27 = vunpack.c.l.bf16 %v1793_v23  ;;  %v1803_v28 = vld [vmem:[%s3039_s5 + $0x38] sm:$0xff]   ;;  %v1802_v29 = vld [vmem:[%s3039_s5 + $0x30] sm:$0xff]   ;;  %v1801_v34 = vld [vmem:[%s3039_s5 + $0x28] sm:$0xff]  }
  0x2a   : > { %1966 = vmatprep.subr.mxu0 %v1757_v16  ;;  %v1791_v30 = vld [vmem:[%s3036_s2 + $0x10] sm:$0xff]   ;;  %v1788_v31 = vunpack.c.l.bf16 %v1803_v28  ;;  %v1789_v32 = vunpack.c.h.bf16 %v1803_v28  ;;  %v1741_v33 = vunpack.c.h.bf16 %v1792_v26  ;;  %v1785_v35 = vunpack.c.h.bf16 %v1802_v29  ;;  %v1790_v39 = vld [vmem:[%s3036_s2 + $0x8] sm:$0xff]   ;;  %v2569_v42 = vld [vmem:[%s3039_s5 + $0x20] sm:$0xff]  }
  0x2b   : > { %1967 = vmatpush3.msra.mxu0 %v1757_v16  ;;  %v1740_v36 = vunpack.c.l.bf16 %v1792_v26  ;;  %v1784_v37 = vunpack.c.l.bf16 %v1802_v29  ;;  %v1737_v38 = vunpack.c.h.bf16 %v1791_v30  ;;  %v1781_v40 = vunpack.c.h.bf16 %v1801_v34  ;;  %v1727_v45 = vld [vmem:[%s3036_s2] sm:$0xff]   ;;  %v470_v50 = vld [vmem:[%s2536_s11 + $0x8] sm:$0xff]  ;;  %v2583_v51 = vld [vmem:[%s3037_s3 + $0x38] sm:$0xff]  }
  0x2c   : > { %1968 = vmatprep.subr.mxu0 %v1756_v15  ;;  %2011 = vmatpush3.msra.mxu1 %v1789_v32  ;;  %v1736_v41 = vunpack.c.l.bf16 %v1791_v30  ;;  %v1780_v43 = vunpack.c.l.bf16 %v1801_v34  ;;  %v1733_v44 = vunpack.c.h.bf16 %v1790_v39  ;;  %v1777_v46 = vunpack.c.h.bf16 %v2569_v42  ;;  %v471_v52 = vld [vmem:[%s2536_s11 + $0x10] sm:$0xff]  ;;  %v472_v54 = vld [vmem:[%s2536_s11 + $0x18] sm:$0xff]  ;;  %v473_v55 = vld [vmem:[%s2536_s11 + $0x20] sm:$0xff] }
  0x2d   : > { %1969 = vmatpush3.msra.mxu0 %v1756_v15  ;;  %2012 = vmatprep.subr.mxu1 %v2412_v17  ;;  %v1732_v47 = vunpack.c.l.bf16 %v1790_v39  ;;  %v1729_v48 = vunpack.c.h.bf16 %v1727_v45  ;;  %v1728_v49 = vunpack.c.l.bf16 %v1727_v45  ;;  %v2591_v53 = vld [vmem:[%s3037_s3 + $0x30] sm:$0xff]   ;;  %v2600_v56 = vld [vmem:[%s3037_s3 + $0x28] sm:$0xff]   ;;  %v2609_v59 = vld [vmem:[%s3037_s3 + $0x20] sm:$0xff]   ;;  %v1776_v2 = vunpack.c.l.bf16 %v2569_v42 }
  0x2e   : > { %1970 = vmatprep.subr.mxu0 %v1753_v18  ;;  %2013 = vmatpush3.msra.mxu1 %v1788_v31  ;;  %v474_v57 = vld [vmem:[%s2536_s11 + $0x28] sm:$0xff]  ;;  %v475_v58 = vld [vmem:[%s2536_s11 + $0x30] sm:$0xff]  ;;  %v476_v60 = vld [vmem:[%s2536_s11 + $0x38] sm:$0xff]  ;;  %s428_s11 = scalar_lea.vmem [#allocation3], %s2682_s19  ;;  %s1722_s19 = sshll.u32 (%p2500_p5), %s2481_s12, 3 }
  0x2f   : > { %1971 = vmatpush3.msra.mxu0 %v1753_v18  ;;  %2014 = vmatprep.subr.mxu1 %v2412_v17  ;;  %v2617_v61 = vld [vmem:[%s3037_s3 + $0x18] sm:$0xff]   ;;  %v2626_v62 = vld [vmem:[%s3037_s3 + $0x10] sm:$0xff]   ;;  %v2633_v63 = vld [vmem:[%s3037_s3 + $0x8] sm:$0xff]   ;;  %s1464_s28 = scalar_lea.vmem (%p2500_p5), %s3042_s8, %s1722_s19 }
  0x30   : > { %1972 = vmatprep.subr.mxu0 %v1752_v21  ;;  %2015 = vmatpush3.msra.mxu1 %v1785_v35  ;;  %v2640_v0 = vld [vmem:[%s3037_s3] sm:$0xff]   ;;  %v1799_v3 = vld [vmem:[%s3039_s5 + $0x18] sm:$0xff]   ;;  %v1798_v6 = vld [vmem:[%s3039_s5 + $0x10] sm:$0xff]  }
  0x31   : > { %1973 = vmatpush3.msra.mxu0 %v1752_v21  ;;  %2016 = vmatprep.subr.mxu1 %v2412_v17  ;;  %v1773_v4 = vunpack.c.h.bf16 %v1799_v3  ;;  %v1772_v5 = vunpack.c.l.bf16 %v1799_v3  ;;  %v1769_v7 = vunpack.c.h.bf16 %v1798_v6  ;;  %v1797_v8 = vld [vmem:[%s3039_s5 + $0x8] sm:$0xff]   ;;  %v1768_v9 = vunpack.c.l.bf16 %v1798_v6  ;;  %v1759_v11 = vld [vmem:[%s3039_s5] sm:$0xff]   ;;  %v479_v18 = vld [vmem:[%s428_s11 + $0x10] sm:$0xff] }
  0x32   : > { %1974 = vmatprep.subr.mxu0 %v1749_v22  ;;  %2017 = vmatpush3.msra.mxu1 %v1784_v37  ;;  %v1765_v10 = vunpack.c.h.bf16 %v1797_v8  ;;  %v1764_v12 = vunpack.c.l.bf16 %v1797_v8  ;;  %v1761_v13 = vunpack.c.h.bf16 %v1759_v11  ;;  %v1760_v14 = vunpack.c.l.bf16 %v1759_v11  ;;  %v477_v15 = vld [vmem:[%s428_s11] sm:$0xff]  ;;  %v478_v16 = vld [vmem:[%s428_s11 + $0x8] sm:$0xff]  ;;  %v480_v19 = vld [vmem:[%s428_s11 + $0x18] sm:$0xff] }
  0x33   : > { %1975 = vmatpush3.msra.mxu0 %v1749_v22  ;;  %2018 = vmatprep.subr.mxu1 %v2412_v17  ;;  %v481_v20 = vld [vmem:[%s428_s11 + $0x20] sm:$0xff] }
  0x34   : > { %1976 = vmatprep.subr.mxu0 %v1748_v24  ;;  %2019 = vmatpush3.msra.mxu1 %v1781_v40  ;;  %v1692_v21 = vld [vmem:[%s3038_s4] ss:$0 sm:$0xff] }
  0x35   : > { %1977 = vmatpush3.msra.mxu0 %v1748_v24  ;;  %2020 = vmatprep.subr.mxu1 %v2412_v17 }
  0x36   : > { %1978 = vmatprep.subr.mxu0 %v1745_v25  ;;  %2021 = vmatpush3.msra.mxu1 %v1780_v43 }
  0x37   : > { %1979 = vmatpush3.msra.mxu0 %v1745_v25  ;;  %2022 = vmatprep.subr.mxu1 %v2412_v17 }
  0x38   : > { %1980 = vmatprep.subr.mxu0 %v1744_v27  ;;  %2023 = vmatpush3.msra.mxu1 %v1777_v46 }
  0x39   : > { %1981 = vmatpush3.msra.mxu0 %v1744_v27  ;;  %2024 = vmatprep.subr.mxu1 %v2412_v17 }
  0x3a   : > { %1982 = vmatprep.subr.mxu0 %v1741_v33  ;;  %2025 = vmatpush3.msra.mxu1 %v1776_v2 }
  0x3b   : > { %1983 = vmatpush3.msra.mxu0 %v1741_v33  ;;  %2026 = vmatprep.subr.mxu1 %v2412_v17 }
  0x3c   : > { %1984 = vmatprep.subr.mxu0 %v1740_v36  ;;  %2027 = vmatpush3.msra.mxu1 %v1773_v4 }
  0x3d   : > { %1985 = vmatpush3.msra.mxu0 %v1740_v36  ;;  %2028 = vmatprep.subr.mxu1 %v2412_v17 }
  0x3e   : > { %1986 = vmatprep.subr.mxu0 %v1737_v38  ;;  %2029 = vmatpush3.msra.mxu1 %v1772_v5 }
  0x3f   : > { %1987 = vmatpush3.msra.mxu0 %v1737_v38  ;;  %2030 = vmatprep.subr.mxu1 %v2412_v17 }
  0x40   : > { %1988 = vmatprep.subr.mxu0 %v1736_v41  ;;  %2031 = vmatpush3.msra.mxu1 %v1769_v7 }
  0x41   : > { %1989 = vmatpush3.msra.mxu0 %v1736_v41  ;;  %2032 = vmatprep.subr.mxu1 %v2412_v17 }
  0x42   : > { %1990 = vmatprep.subr.mxu0 %v1733_v44  ;;  %2033 = vmatpush3.msra.mxu1 %v1768_v9 }
  0x43   : > { %1991 = vmatpush3.msra.mxu0 %v1733_v44  ;;  %2034 = vmatprep.subr.mxu1 %v2412_v17 }
  0x44   : > { %1992 = vmatprep.subr.mxu0 %v1732_v47  ;;  %2035 = vmatpush3.msra.mxu1 %v1765_v10 }
  0x45   : > { %1993 = vmatpush3.msra.mxu0 %v1732_v47  ;;  %2036 = vmatprep.subr.mxu1 %v2412_v17  ;;  %v2758_v47 = vld [vmem:[%s3041_s7] ss:$0 sm:$0xff] }
  0x46   : > { %1994 = vmatprep.subr.mxu0 %v1729_v48  ;;  %2037 = vmatpush3.msra.mxu1 %v1764_v12 }
  0x47   : > { %1995 = vmatpush3.msra.mxu0 %v1729_v48  ;;  %2038 = vmatprep.subr.mxu1 %v2412_v17 }
  0x48   : > { %1996 = vmatprep.subr.mxu0 %v1728_v49  ;;  %2039 = vmatpush3.msra.mxu1 %v1761_v13 }
  0x49   : > { %1997 = vmatpush3.msra.mxu0 %v1728_v49  ;;  %2040 = vmatprep.subr.mxu1 %v2412_v17 }
  0x4a   : > { %1999 = vmatmul.mubr.f32.vlgmr.msra.gmra.mxu0 %v470_v50  ;;  %2057 = vmatprep.subr.bf16.mxu0 %v2412_v17 }
  0x4b   : > { %2058 = vmatpush3.bf16.msra.mxu0 %v2583_v51  ;;  %2001 = vmatprep.mubr.f32.mxu0 %v471_v52 }
  0x4c   : > { %2059 = vmatprep.subr.bf16.mxu0 %v2412_v17  ;;  %2041 = vmatpush3.msra.mxu1 %v1760_v14 }
  0x4d   : > { %2043 = vmatmul.mubr.f32.vlgmr.msra.gmra.mxu1 %v477_v15  ;;  %2077 = vmatprep.subr.bf16.mxu1 %v2412_v17 }
  0x4e   : > { %2002 = vmatmul.mubr.f32.gmra.mxu0 %v472_v54  ;;  %2078 = vmatpush3.bf16.msra.mxu1 %v2583_v51 }
  0x4f   : > { %2060 = vmatpush3.bf16.msra.mxu0 %v2591_v53  ;;  %2004 = vmatprep.mubr.f32.mxu0 %v473_v55 }
  0x50   : > { %2061 = vmatprep.subr.bf16.mxu0 %v2412_v17  ;;  %2045 = vmatprep.mubr.msk.f32.mxu1 %vm2413_vm0, %v2412_v17 }
  0x51   : > { %2079 = vmatprep.subr.bf16.mxu1 %v2412_v17  ;;  %2046 = vmatmul.mubr.f32.gmra.mxu1 %v478_v16 }
  0x52   : > { %2005 = vmatmul.mubr.f32.gmra.mxu0 %v474_v57  ;;  %2080 = vmatpush3.bf16.msra.mxu1 %v2591_v53 }
  0x53   : > { %2062 = vmatpush3.bf16.msra.mxu0 %v2600_v56  ;;  %2007 = vmatprep.mubr.f32.mxu0 %v475_v58 }
  0x54   : > { %2063 = vmatprep.subr.bf16.mxu0 %v2412_v17  ;;  %2081 = vmatprep.subr.bf16.mxu1 %v2412_v17 }
  0x55   : > { %2048 = vmatprep.mubr.msk.f32.mxu1 %vm2413_vm0, %v2412_v17 }
  0x56   : > { %2008 = vmatmul.mubr.f32.gmra.mxu0 %v476_v60  ;;  %2082 = vmatpush3.bf16.msra.mxu1 %v2600_v56 }
  0x57   : > { %2064 = vmatpush3.bf16.msra.mxu0 %v2609_v59  ;;  %2073 = vmatprep.mubr.msk.bf16.mxu0 %vm2413_vm0, %v2412_v17 }
  0x58   : > { %2065 = vmatprep.subr.bf16.mxu0 %v2412_v17  ;;  %2083 = vmatprep.subr.bf16.mxu1 %v2412_v17 }
  0x59   : > { %2049 = vmatmul.mubr.f32.gmra.mxu1 %v479_v18 }
  0x5a   : > { %2084 = vmatpush3.bf16.msra.mxu1 %v2609_v59  ;;  %2051 = vmatprep.mubr.msk.f32.mxu1 %vm2413_vm0, %v2412_v17 }
  0x5b   : > { %2066 = vmatpush3.bf16.msra.mxu0 %v2617_v61  ;;  %2085 = vmatprep.subr.bf16.mxu1 %v2412_v17 }
  0x5c   : > { %2067 = vmatprep.subr.bf16.mxu0 %v2412_v17 }
  0x5d   : > { %2052 = vmatmul.mubr.f32.gmra.mxu1 %v480_v19 }
  0x5e   : > { %2086 = vmatpush3.bf16.msra.mxu1 %v2617_v61  ;;  %2054 = vmatprep.mubr.msk.f32.mxu1 %vm2413_vm0, %v2412_v17 }
  0x5f   : > { %2068 = vmatpush3.bf16.msra.mxu0 %v2626_v62  ;;  %2087 = vmatprep.subr.bf16.mxu1 %v2412_v17 }
  0x60   : > { %2069 = vmatprep.subr.bf16.mxu0 %v2412_v17 }
  0x61   : > { %2055 = vmatmul.mubr.f32.gmra.mxu1 %v481_v20 }
  0x62   : > { %2088 = vmatpush3.bf16.msra.mxu1 %v2626_v62  ;;  %2093 = vmatprep.mubr.msk.bf16.mxu1 %vm2413_vm0, %v2412_v17 }
  0x63   : > { %2070 = vmatpush3.bf16.msra.mxu0 %v2633_v63  ;;  %2089 = vmatprep.subr.bf16.mxu1 %v2412_v17 }
  0x64   : > { %2071 = vmatprep.subr.bf16.mxu0 %v2412_v17 }
  0x66   : > { %2090 = vmatpush3.bf16.msra.mxu1 %v2633_v63 }
  0x67   : > { %2072 = vmatpush3.bf16.msra.mxu0 %v2640_v0  ;;  %2091 = vmatprep.subr.bf16.mxu1 %v2412_v17 }
  0x68   : > { %2097 = vmatprep.subr.bf16.mxu0 %v2412_v17 }
  0x6a   : > { %2074 = vmatmul.mubr.bf16.vlgmr.msra.gmra.mxu0 %v2414_v1  ;;  %2092 = vmatpush3.bf16.msra.mxu1 %v2640_v0 }
  0x6b   : > { %2098 = vmatpush3.bf16.msra.mxu0 %v2583_v51  ;;  %2113 = vmatprep.mubr.msk.bf16.mxu0 %vm2413_vm0, %v2412_v17 }
  0x6c   : > { %2099 = vmatprep.subr.bf16.mxu0 %v2412_v17  ;;  %2117 = vmatprep.subr.bf16.mxu1 %v2412_v17 }
  0x6f   : > { %2100 = vmatpush3.bf16.msra.mxu0 %v2591_v53 }
  0x70   : > { %2101 = vmatprep.subr.bf16.mxu0 %v2412_v17 }
  0x73   : > { %2102 = vmatpush3.bf16.msra.mxu0 %v2600_v56 }
  0x74   : > { %2103 = vmatprep.subr.bf16.mxu0 %v2412_v17 }
  0x77   : > { %2104 = vmatpush3.bf16.msra.mxu0 %v2609_v59 }
  0x78   : > { %2105 = vmatprep.subr.bf16.mxu0 %v2412_v17 }
  0x7b   : > { %2106 = vmatpush3.bf16.msra.mxu0 %v2617_v61 }
  0x7c   : > { %2107 = vmatprep.subr.bf16.mxu0 %v2412_v17 }
  0x7f   : > { %2108 = vmatpush3.bf16.msra.mxu0 %v2626_v62 }
  0x80   : > { %2109 = vmatprep.subr.bf16.mxu0 %v2412_v17 }
  0x83   : > { %2110 = vmatpush3.bf16.msra.mxu0 %v2633_v63 }
  0x84   : > { %2111 = vmatprep.subr.bf16.mxu0 %v2412_v17 }
  0x87   : > { %2112 = vmatpush3.bf16.msra.mxu0 %v2640_v0 }
  0x88   : > { %2137 = vmatprep.subr.bf16.mxu0 %v2412_v17 }
 0x10a   : > { %v2000_v22 = vpop.f32.mrf.mxu0 }
 0x10b   : > { %v593_v23 = vadd.f32 %v2000_v22, %v1692_v21 }
 0x10c   : > { %v587_v24 = vpop.f32.mrf.mxu0 }
 0x10d   : > { %v588_v37 = vadd.f32 %v1692_v21, %v587_v24  ;;  %v2753_v45 = vpop.f32.mrf.mxu1 }
 0x10e   : > { %v2003_v25 = vpop.f32.mrf.mxu0 }
 0x10f   : > { %v2719_v26 = vadd.f32 %v2003_v25, %v1692_v21  ;;  %v2044_v46 = vpop.f32.mrf.mxu1 }
 0x110   : > { %v597_v27 = vpop.f32.mrf.mxu0  ;;  %v2907_v46 = vld [vmem:[%s3040_s6 + $0x10] sm:$0xff]  }
 0x111   : > { %v2721_v28 = vadd.f32 %v1692_v21, %v597_v27  ;;  %v736_v48 = vpop.f32.mrf.mxu1 }
 0x112   : > { %v2006_v29 = vpop.f32.mrf.mxu0  ;;  %v2761_v49 = vadd.f32 %v2758_v47, %v736_v48  ;;  %v2916_v48 = vld [vmem:[%s3040_s6 + $0x8] sm:$0xff]  }
 0x113   : > { %v2723_v30 = vadd.f32 %v2006_v29, %v1692_v21  ;;  %v2047_v50 = vpop.f32.mrf.mxu1 }
 0x114   : > { %v607_v31 = vpop.f32.mrf.mxu0  ;;  %v2925_v50 = vld [vmem:[%s3040_s6] sm:$0xff]  }
 0x115   : > { %v2725_v32 = vadd.f32 %v1692_v21, %v607_v31 }
 0x116   : > { %v2009_v33 = vpop.f32.mrf.mxu0 }
 0x117   : > { %v2727_v34 = vadd.f32 %v2009_v33, %v1692_v21 }
 0x118   : > { %v617_v35 = vpop.f32.mrf.mxu0 }
 0x119   : > { %v2729_v36 = vadd.f32 %v1692_v21, %v617_v35  ;;  %v741_v52 = vpop.f32.mrf.mxu1 }
 0x11a   : > { %v2764_v54 = vadd.f32 %v2758_v47, %v741_v52 }
 0x11b   : > { %v2050_v55 = vpop.f32.mrf.mxu1 }
 0x11d   : > { %v746_v57 = vpop.f32.mrf.mxu1 }
 0x11e   : > { %v2767_v58 = vadd.f32 %v2758_v47, %v746_v57 }
 0x11f   : > { %v2053_v60 = vpop.f32.mrf.mxu1 }
 0x121   : > { %v751_v1 = vpop.f32.mrf.mxu1 }
 0x122   : > { %v2770_v2 = vadd.f32 %v2758_v47, %v751_v1 }
 0x123   : > { %v2056_v3 = vpop.f32.mrf.mxu1 }
 0x12a   : > { %v869_v38 = vpop.f32.mrf.mxu0 }
 0x12b   : > { %v870_v39 = vadd.f32 %v869_v38, %v588_v37 }
 0x12c   : > { %v2075_v40 = vpop.f32.mrf.mxu0 }
 0x12d   : > { %2362 = vtanh.f32 %v870_v39 }
 0x12e   : > { %v872_v41 = vpop.f32.mrf.mxu0 }
 0x130   : > { %v2076_v42 = vpop.f32.mrf.mxu0 }
 0x13a   : > { %v2363_v43 = vpop.eup %2362 }
 0x13b   : > { %876 = vst [vmem:[%s2732_s17] sm:$0xff] %v2363_v43  ;;  %v877_v44 = vpack.c.bf16 %v2363_v43, %v2363_v43 }
 0x13d   : > { %2094 = vmatmul.mubr.bf16.vlgmr.msra.gmra.mxu1 %v877_v44  ;;  %v2898_v44 = vld [vmem:[%s3040_s6 + $0x18] sm:$0xff]  }
 0x13e   : > { %2118 = vmatpush3.bf16.msra.mxu1 %v2583_v51  ;;  %2133 = vmatprep.mubr.msk.bf16.mxu1 %vm2413_vm0, %v2412_v17 }
 0x13f   : > { %2119 = vmatprep.subr.bf16.mxu1 %v2412_v17 }
 0x142   : > { %2120 = vmatpush3.bf16.msra.mxu1 %v2591_v53 }
 0x143   : > { %2121 = vmatprep.subr.bf16.mxu1 %v2412_v17 }
 0x146   : > { %2122 = vmatpush3.bf16.msra.mxu1 %v2600_v56 }
 0x147   : > { %2123 = vmatprep.subr.bf16.mxu1 %v2412_v17 }
 0x14a   : > { %2124 = vmatpush3.bf16.msra.mxu1 %v2609_v59 }
 0x14b   : > { %2125 = vmatprep.subr.bf16.mxu1 %v2412_v17 }
 0x14e   : > { %2126 = vmatpush3.bf16.msra.mxu1 %v2617_v61 }
 0x14f   : > { %2127 = vmatprep.subr.bf16.mxu1 %v2412_v17 }
 0x152   : > { %2128 = vmatpush3.bf16.msra.mxu1 %v2626_v62 }
 0x153   : > { %2129 = vmatprep.subr.bf16.mxu1 %v2412_v17 }
 0x156   : > { %2130 = vmatpush3.bf16.msra.mxu1 %v2633_v63 }
 0x157   : > { %2131 = vmatprep.subr.bf16.mxu1 %v2412_v17 }
 0x15a   : > { %2132 = vmatpush3.bf16.msra.mxu1 %v2640_v0 }
 0x15b   : > { %2157 = vmatprep.subr.bf16.mxu1 %v2412_v17 }
 0x1fd   : > { %v912_v4 = vpop.f32.mrf.mxu1 }
 0x1fe   : > { %v913_v5 = vadd.f32 %v912_v4, %v593_v23 }
 0x1ff   : > { %v2095_v6 = vpop.f32.mrf.mxu1 }
 0x200   : > { %2364 = vtanh.f32 %v913_v5 }
 0x201   : > { %v915_v7 = vpop.f32.mrf.mxu1 }
 0x203   : > { %v2096_v8 = vpop.f32.mrf.mxu1 }
 0x20d   : > { %v2365_v9 = vpop.eup %2364 }
 0x20e   : > { %1702 = vst [vmem:[%s2732_s17 + $0x8] sm:$0xff] %v2365_v9  ;;  %v921_v10 = vpack.c.bf16 %v2365_v9, %v2365_v9 }
 0x210   : > { %2114 = vmatmul.mubr.bf16.vlgmr.msra.gmra.mxu0 %v921_v10 }
 0x211   : > { %2138 = vmatpush3.bf16.msra.mxu0 %v2583_v51  ;;  %2153 = vmatprep.mubr.msk.bf16.mxu0 %vm2413_vm0, %v2412_v17 }
 0x212   : > { %2139 = vmatprep.subr.bf16.mxu0 %v2412_v17 }
 0x215   : > { %2140 = vmatpush3.bf16.msra.mxu0 %v2591_v53 }
 0x216   : > { %2141 = vmatprep.subr.bf16.mxu0 %v2412_v17 }
 0x219   : > { %2142 = vmatpush3.bf16.msra.mxu0 %v2600_v56 }
 0x21a   : > { %2143 = vmatprep.subr.bf16.mxu0 %v2412_v17 }
 0x21d   : > { %2144 = vmatpush3.bf16.msra.mxu0 %v2609_v59 }
 0x21e   : > { %2145 = vmatprep.subr.bf16.mxu0 %v2412_v17 }
 0x221   : > { %2146 = vmatpush3.bf16.msra.mxu0 %v2617_v61 }
 0x222   : > { %2147 = vmatprep.subr.bf16.mxu0 %v2412_v17 }
 0x225   : > { %2148 = vmatpush3.bf16.msra.mxu0 %v2626_v62 }
 0x226   : > { %2149 = vmatprep.subr.bf16.mxu0 %v2412_v17 }
 0x229   : > { %2150 = vmatpush3.bf16.msra.mxu0 %v2633_v63 }
 0x22a   : > { %2151 = vmatprep.subr.bf16.mxu0 %v2412_v17 }
 0x22d   : > { %2152 = vmatpush3.bf16.msra.mxu0 %v2640_v0 }
 0x22e   : > { %2177 = vmatprep.subr.bf16.mxu0 %v2412_v17 }
 0x2d0   : > { %v956_v11 = vpop.f32.mrf.mxu0 }
 0x2d1   : > { %v957_v12 = vadd.f32 %v956_v11, %v2721_v28 }
 0x2d2   : > { %v2115_v13 = vpop.f32.mrf.mxu0 }
 0x2d3   : > { %2366 = vtanh.f32 %v957_v12 }
 0x2d4   : > { %v959_v14 = vpop.f32.mrf.mxu0 }
 0x2d6   : > { %v2116_v15 = vpop.f32.mrf.mxu0 }
 0x2e0   : > { %v2367_v16 = vpop.eup %2366 }
 0x2e1   : > { %1703 = vst [vmem:[%s2732_s17 + $0x10] sm:$0xff] %v2367_v16  ;;  %v965_v18 = vpack.c.bf16 %v2367_v16, %v2367_v16 }
 0x2e3   : > { %2134 = vmatmul.mubr.bf16.vlgmr.msra.gmra.mxu1 %v965_v18 }
 0x2e4   : > { %2158 = vmatpush3.bf16.msra.mxu1 %v2583_v51  ;;  %2173 = vmatprep.mubr.msk.bf16.mxu1 %vm2413_vm0, %v2412_v17 }
 0x2e5   : > { %2159 = vmatprep.subr.bf16.mxu1 %v2412_v17 }
 0x2e8   : > { %2160 = vmatpush3.bf16.msra.mxu1 %v2591_v53 }
 0x2e9   : > { %2161 = vmatprep.subr.bf16.mxu1 %v2412_v17 }
 0x2ec   : > { %2162 = vmatpush3.bf16.msra.mxu1 %v2600_v56 }
 0x2ed   : > { %2163 = vmatprep.subr.bf16.mxu1 %v2412_v17 }
 0x2f0   : > { %2164 = vmatpush3.bf16.msra.mxu1 %v2609_v59 }
 0x2f1   : > { %2165 = vmatprep.subr.bf16.mxu1 %v2412_v17 }
 0x2f4   : > { %2166 = vmatpush3.bf16.msra.mxu1 %v2617_v61 }
 0x2f5   : > { %2167 = vmatprep.subr.bf16.mxu1 %v2412_v17 }
 0x2f8   : > { %2168 = vmatpush3.bf16.msra.mxu1 %v2626_v62 }
 0x2f9   : > { %2169 = vmatprep.subr.bf16.mxu1 %v2412_v17 }
 0x2fc   : > { %2170 = vmatpush3.bf16.msra.mxu1 %v2633_v63 }
 0x2fd   : > { %2171 = vmatprep.subr.bf16.mxu1 %v2412_v17 }
 0x300   : > { %2172 = vmatpush3.bf16.msra.mxu1 %v2640_v0 }
 0x301   : > { %2197 = vmatprep.subr.bf16.mxu1 %v2412_v17 }
 0x3a3   : > { %v1000_v19 = vpop.f32.mrf.mxu1 }
 0x3a4   : > { %v1001_v20 = vadd.f32 %v1000_v19, %v2719_v26 }
 0x3a5   : > { %v2135_v21 = vpop.f32.mrf.mxu1 }
 0x3a6   : > { %2368 = vtanh.f32 %v1001_v20 }
 0x3a7   : > { %v1003_v22 = vpop.f32.mrf.mxu1 }
 0x3a9   : > { %v2136_v23 = vpop.f32.mrf.mxu1 }
 0x3b3   : > { %v2369_v24 = vpop.eup %2368 }
 0x3b4   : > { %1704 = vst [vmem:[%s2732_s17 + $0x18] sm:$0xff] %v2369_v24  ;;  %v1009_v25 = vpack.c.bf16 %v2369_v24, %v2369_v24 }
 0x3b6   : > { %2154 = vmatmul.mubr.bf16.vlgmr.msra.gmra.mxu0 %v1009_v25 }
 0x3b7   : > { %2178 = vmatpush3.bf16.msra.mxu0 %v2583_v51  ;;  %2193 = vmatprep.mubr.msk.bf16.mxu0 %vm2413_vm0, %v2412_v17 }
 0x3b8   : > { %2179 = vmatprep.subr.bf16.mxu0 %v2412_v17 }
 0x3bb   : > { %2180 = vmatpush3.bf16.msra.mxu0 %v2591_v53 }
 0x3bc   : > { %2181 = vmatprep.subr.bf16.mxu0 %v2412_v17 }
 0x3bf   : > { %2182 = vmatpush3.bf16.msra.mxu0 %v2600_v56 }
 0x3c0   : > { %2183 = vmatprep.subr.bf16.mxu0 %v2412_v17 }
 0x3c3   : > { %2184 = vmatpush3.bf16.msra.mxu0 %v2609_v59 }
 0x3c4   : > { %2185 = vmatprep.subr.bf16.mxu0 %v2412_v17 }
 0x3c7   : > { %2186 = vmatpush3.bf16.msra.mxu0 %v2617_v61 }
 0x3c8   : > { %2187 = vmatprep.subr.bf16.mxu0 %v2412_v17 }
 0x3cb   : > { %2188 = vmatpush3.bf16.msra.mxu0 %v2626_v62 }
 0x3cc   : > { %2189 = vmatprep.subr.bf16.mxu0 %v2412_v17 }
 0x3cf   : > { %2190 = vmatpush3.bf16.msra.mxu0 %v2633_v63 }
 0x3d0   : > { %2191 = vmatprep.subr.bf16.mxu0 %v2412_v17 }
 0x3d3   : > { %2192 = vmatpush3.bf16.msra.mxu0 %v2640_v0 }
 0x3d4   : > { %2217 = vmatprep.subr.bf16.mxu0 %v2412_v17 }
 0x476   : > { %v1044_v26 = vpop.f32.mrf.mxu0 }
 0x477   : > { %v1045_v27 = vadd.f32 %v1044_v26, %v2725_v32 }
 0x478   : > { %v2155_v28 = vpop.f32.mrf.mxu0 }
 0x479   : > { %2370 = vtanh.f32 %v1045_v27 }
 0x47a   : > { %v1047_v29 = vpop.f32.mrf.mxu0 }
 0x47c   : > { %v2156_v31 = vpop.f32.mrf.mxu0 }
 0x486   : > { %v2371_v33 = vpop.eup %2370 }
 0x487   : > { %1705 = vst [vmem:[%s2732_s17 + $0x20] sm:$0xff] %v2371_v33  ;;  %v1053_v35 = vpack.c.bf16 %v2371_v33, %v2371_v33 }
 0x489   : > { %2174 = vmatmul.mubr.bf16.vlgmr.msra.gmra.mxu1 %v1053_v35 }
 0x48a   : > { %2198 = vmatpush3.bf16.msra.mxu1 %v2583_v51  ;;  %2213 = vmatprep.mubr.msk.bf16.mxu1 %vm2413_vm0, %v2412_v17 }
 0x48b   : > { %2199 = vmatprep.subr.bf16.mxu1 %v2412_v17 }
 0x48e   : > { %2200 = vmatpush3.bf16.msra.mxu1 %v2591_v53 }
 0x48f   : > { %2201 = vmatprep.subr.bf16.mxu1 %v2412_v17 }
 0x492   : > { %2202 = vmatpush3.bf16.msra.mxu1 %v2600_v56 }
 0x493   : > { %2203 = vmatprep.subr.bf16.mxu1 %v2412_v17 }
 0x496   : > { %2204 = vmatpush3.bf16.msra.mxu1 %v2609_v59 }
 0x497   : > { %2205 = vmatprep.subr.bf16.mxu1 %v2412_v17 }
 0x49a   : > { %2206 = vmatpush3.bf16.msra.mxu1 %v2617_v61 }
 0x49b   : > { %2207 = vmatprep.subr.bf16.mxu1 %v2412_v17 }
 0x49e   : > { %2208 = vmatpush3.bf16.msra.mxu1 %v2626_v62 }
 0x49f   : > { %2209 = vmatprep.subr.bf16.mxu1 %v2412_v17 }
 0x4a2   : > { %2210 = vmatpush3.bf16.msra.mxu1 %v2633_v63  ;;  %v2858_v63 = vld [vmem:[%s3040_s6 + $0x38] sm:$0xff]  }
 0x4a3   : > { %2211 = vmatprep.subr.bf16.mxu1 %v2412_v17 }
 0x4a6   : > { %2212 = vmatpush3.bf16.msra.mxu1 %v2640_v0  ;;  %v2864_v0 = vld [vmem:[%s3040_s6 + $0x30] sm:$0xff]  }
 0x4a7   : > { %2237 = vmatprep.subr.bf16.mxu1 %v2412_v17 }
 0x549   : > { %v1088_v51 = vpop.f32.mrf.mxu1 }
 0x54a   : > { %v1089_v53 = vadd.f32 %v1088_v51, %v2723_v30  ;;  %v2871_v30 = vld [vmem:[%s3040_s6 + $0x28] sm:$0xff]  }
 0x54b   : > { %v2175_v56 = vpop.f32.mrf.mxu1 }
 0x54c   : > { %2372 = vtanh.f32 %v1089_v53  ;;  %v1511_v56 = vld [vmem:[%s2732_s17 + $0x10] sm:$0xff] (%p2500_p5) }
 0x54d   : > { %v1091_v59 = vpop.f32.mrf.mxu1  ;;  %1512 = vst [vmem:[%s1464_s28 + $0x20] sm:$0xff] (%p2500_p5), %v1511_v56 }
 0x54e   : > { %v1513_v59 = vld [vmem:[%s2732_s17 + $0x18] sm:$0xff] (%p2500_p5) }
 0x54f   : > { %v2176_v61 = vpop.f32.mrf.mxu1  ;;  %1514 = vst [vmem:[%s1464_s28 + $0x30] sm:$0xff] (%p2500_p5), %v1513_v59 }
 0x550   : > { %v1515_v61 = vld [vmem:[%s2732_s17 + $0x20] sm:$0xff] (%p2500_p5) }
 0x551   : > { %1516 = vst [vmem:[%s1464_s28 + $0x40] sm:$0xff] (%p2500_p5), %v1515_v61 }
 0x559   : > { %v2373_v32 = vpop.eup %2372 }
 0x55a   : > { %1706 = vst [vmem:[%s2732_s17 + $0x28] sm:$0xff] %v2373_v32  ;;  %v1097_v62 = vpack.c.bf16 %v2373_v32, %v2373_v32 }
 0x55c   : > { %2194 = vmatmul.mubr.bf16.vlgmr.msra.gmra.mxu0 %v1097_v62 }
 0x55d   : > { %2233 = vmatprep.mubr.msk.bf16.mxu0 %vm2413_vm0, %v2412_v17  ;;  %2218 = vmatpush3.bf16.msra.mxu0 %v2858_v63 }
 0x55e   : > { %2219 = vmatprep.subr.bf16.mxu0 %v2412_v17 }
 0x561   : > { %2220 = vmatpush3.bf16.msra.mxu0 %v2864_v0  ;;  %v1517_v32 = vld [vmem:[%s2732_s17 + $0x28] sm:$0xff] (%p2500_p5) }
 0x562   : > { %2221 = vmatprep.subr.bf16.mxu0 %v2412_v17  ;;  %1518 = vst [vmem:[%s1464_s28 + $0x50] sm:$0xff] (%p2500_p5), %v1517_v32 }
 0x565   : > { %2222 = vmatpush3.bf16.msra.mxu0 %v2871_v30 }
 0x566   : > { %2223 = vmatprep.subr.bf16.mxu0 %v2412_v17 }
 0x61c   : > { %v1132_v37 = vpop.f32.mrf.mxu0 }
 0x61d   : > { %v1133_v38 = vadd.f32 %v1132_v37, %v2729_v36  ;;  %v2889_v36 = vld [vmem:[%s3040_s6 + $0x20] sm:$0xff]  }
 0x61e   : > { %v2195_v39 = vpop.f32.mrf.mxu0  ;;  %2224 = vmatpush3.bf16.msra.mxu0 %v2889_v36 }
 0x61f   : > { %2374 = vtanh.f32 %v1133_v38  ;;  %2225 = vmatprep.subr.bf16.mxu0 %v2412_v17 }
 0x620   : > { %v1135_v40 = vpop.f32.mrf.mxu0 }
 0x622   : > { %v2196_v41 = vpop.f32.mrf.mxu0  ;;  %2226 = vmatpush3.bf16.msra.mxu0 %v2898_v44 }
 0x623   : > { %2227 = vmatprep.subr.bf16.mxu0 %v2412_v17 }
 0x626   : > { %2228 = vmatpush3.bf16.msra.mxu0 %v2907_v46 }
 0x627   : > { %2229 = vmatprep.subr.bf16.mxu0 %v2412_v17 }
 0x62a   : > { %2230 = vmatpush3.bf16.msra.mxu0 %v2916_v48 }
 0x62b   : > { %2231 = vmatprep.subr.bf16.mxu0 %v2412_v17 }
 0x62c   : > { %v2375_v42 = vpop.eup %2374 }
 0x62d   : > { %1707 = vst [vmem:[%s2732_s17 + $0x30] sm:$0xff] %v2375_v42  ;;  %v1141_v43 = vpack.c.bf16 %v2375_v42, %v2375_v42 }
 0x62e   : > { %2232 = vmatpush3.bf16.msra.mxu0 %v2925_v50 }
 0x62f   : > { %2214 = vmatmul.mubr.bf16.vlgmr.msra.gmra.mxu1 %v1141_v43  ;;  %2257 = vmatprep.subr.bf16.mxu0 %v2412_v17 }
 0x630   : > { %2238 = vmatpush3.bf16.msra.mxu1 %v2858_v63  ;;  %2253 = vmatprep.mubr.msk.bf16.mxu1 %vm2413_vm0, %v2412_v17 }
 0x631   : > { %2239 = vmatprep.subr.bf16.mxu1 %v2412_v17 }
 0x634   : > { %2240 = vmatpush3.bf16.msra.mxu1 %v2864_v0  ;;  %v1519_v62 = vld [vmem:[%s2732_s17 + $0x30] sm:$0xff] (%p2500_p5) }
 0x635   : > { %2241 = vmatprep.subr.bf16.mxu1 %v2412_v17  ;;  %1520 = vst [vmem:[%s1464_s28 + $0x60] sm:$0xff] (%p2500_p5), %v1519_v62 }
 0x638   : > { %2242 = vmatpush3.bf16.msra.mxu1 %v2871_v30 }
 0x639   : > { %2243 = vmatprep.subr.bf16.mxu1 %v2412_v17 }
 0x63c   : > { %2244 = vmatpush3.bf16.msra.mxu1 %v2889_v36 }
 0x63d   : > { %2245 = vmatprep.subr.bf16.mxu1 %v2412_v17 }
 0x640   : > { %2246 = vmatpush3.bf16.msra.mxu1 %v2898_v44 }
 0x641   : > { %2247 = vmatprep.subr.bf16.mxu1 %v2412_v17 }
 0x644   : > { %2248 = vmatpush3.bf16.msra.mxu1 %v2907_v46 }
 0x645   : > { %2249 = vmatprep.subr.bf16.mxu1 %v2412_v17 }
 0x648   : > { %2250 = vmatpush3.bf16.msra.mxu1 %v2916_v48 }
 0x649   : > { %2251 = vmatprep.subr.bf16.mxu1 %v2412_v17 }
 0x64c   : > { %2252 = vmatpush3.bf16.msra.mxu1 %v2925_v50 }
 0x64d   : > { %2277 = vmatprep.subr.bf16.mxu1 %v2412_v17 }
 0x6ef   : > { %v1176_v52 = vpop.f32.mrf.mxu1 }
 0x6f0   : > { %v1177_v55 = vadd.f32 %v1176_v52, %v2727_v34  ;;  %v732_v34 = vadd.f32 %v2758_v47, %v2753_v45 }
 0x6f1   : > { %v2215_v57 = vpop.f32.mrf.mxu1 }
 0x6f2   : > { %2376 = vtanh.f32 %v1177_v55 }
 0x6f3   : > { %v1179_v60 = vpop.f32.mrf.mxu1 }
 0x6f5   : > { %v2216_v1 = vpop.f32.mrf.mxu1 }
 0x6ff   : > { %v2377_v3 = vpop.eup %2376 }
 0x700   : > { %1708 = vst [vmem:[%s2732_s17 + $0x38] sm:$0xff] %v2377_v3  ;;  %v1185_v4 = vpack.c.bf16 %v2377_v3, %v2377_v3 }
 0x702   : > { %2234 = vmatmul.mubr.bf16.vlgmr.msra.gmra.mxu0 %v1185_v4 }
 0x703   : > { %2258 = vmatpush3.bf16.msra.mxu0 %v2858_v63  ;;  %2273 = vmatprep.mubr.msk.bf16.mxu0 %vm2413_vm0, %v2412_v17 }
 0x704   : > { %2259 = vmatprep.subr.bf16.mxu0 %v2412_v17 }
 0x707   : > { %2260 = vmatpush3.bf16.msra.mxu0 %v2864_v0 }
 0x708   : > { %2261 = vmatprep.subr.bf16.mxu0 %v2412_v17 }
 0x70b   : > { %2262 = vmatpush3.bf16.msra.mxu0 %v2871_v30 }
 0x70c   : > { %2263 = vmatprep.subr.bf16.mxu0 %v2412_v17 }
 0x70f   : > { %2264 = vmatpush3.bf16.msra.mxu0 %v2889_v36 }
 0x710   : > { %2265 = vmatprep.subr.bf16.mxu0 %v2412_v17 }
 0x713   : > { %2266 = vmatpush3.bf16.msra.mxu0 %v2898_v44 }
 0x714   : > { %2267 = vmatprep.subr.bf16.mxu0 %v2412_v17 }
 0x717   : > { %2268 = vmatpush3.bf16.msra.mxu0 %v2907_v46 }
 0x718   : > { %2269 = vmatprep.subr.bf16.mxu0 %v2412_v17 }
 0x71b   : > { %2270 = vmatpush3.bf16.msra.mxu0 %v2916_v48 }
 0x71c   : > { %2271 = vmatprep.subr.bf16.mxu0 %v2412_v17 }
 0x71f   : > { %2272 = vmatpush3.bf16.msra.mxu0 %v2925_v50 }
 0x720   : > { %2297 = vmatprep.subr.bf16.mxu0 %v2412_v17 }
 0x7c2   : > { %v1268_v5 = vpop.f32.mrf.mxu0 }
 0x7c3   : > { %v1269_v6 = vadd.f32 %v1268_v5, %v732_v34 }
 0x7c4   : > { %v2235_v7 = vpop.f32.mrf.mxu0 }
 0x7c5   : > { %2378 = vtanh.f32 %v1269_v6 }
 0x7c6   : > { %v1271_v8 = vpop.f32.mrf.mxu0 }
 0x7c8   : > { %v2236_v9 = vpop.f32.mrf.mxu0 }
 0x7d2   : > { %v2379_v10 = vpop.eup %2378 }
 0x7d3   : > { %1275 = vst [vmem:[%s2954_s25] sm:$0xff] %v2379_v10  ;;  %v1276_v11 = vpack.c.bf16 %v2379_v10, %v2379_v10 }
 0x7d5   : > { %2254 = vmatmul.mubr.bf16.vlgmr.msra.gmra.mxu1 %v1276_v11 }
 0x7d6   : > { %2278 = vmatpush3.bf16.msra.mxu1 %v2858_v63  ;;  %2293 = vmatprep.mubr.msk.bf16.mxu1 %vm2413_vm0, %v2412_v17 }
 0x7d7   : > { %2279 = vmatprep.subr.bf16.mxu1 %v2412_v17 }
 0x7da   : > { %2280 = vmatpush3.bf16.msra.mxu1 %v2864_v0 }
 0x7db   : > { %2281 = vmatprep.subr.bf16.mxu1 %v2412_v17 }
 0x7de   : > { %2282 = vmatpush3.bf16.msra.mxu1 %v2871_v30 }
 0x7df   : > { %2283 = vmatprep.subr.bf16.mxu1 %v2412_v17 }
 0x7e2   : > { %2284 = vmatpush3.bf16.msra.mxu1 %v2889_v36 }
 0x7e3   : > { %2285 = vmatprep.subr.bf16.mxu1 %v2412_v17 }
 0x7e6   : > { %2286 = vmatpush3.bf16.msra.mxu1 %v2898_v44 }
 0x7e7   : > { %2287 = vmatprep.subr.bf16.mxu1 %v2412_v17 }
 0x7ea   : > { %2288 = vmatpush3.bf16.msra.mxu1 %v2907_v46 }
 0x7eb   : > { %2289 = vmatprep.subr.bf16.mxu1 %v2412_v17 }
 0x7ee   : > { %2290 = vmatpush3.bf16.msra.mxu1 %v2916_v48 }
 0x7ef   : > { %2291 = vmatprep.subr.bf16.mxu1 %v2412_v17 }
 0x7f2   : > { %2292 = vmatpush3.bf16.msra.mxu1 %v2925_v50 }
 0x895   : > { %v1311_v45 = vpop.f32.mrf.mxu1 }
 0x896   : > { %v1312_v47 = vadd.f32 %v1311_v45, %v2761_v49 }
 0x897   : > { %v2255_v12 = vpop.f32.mrf.mxu1 }
 0x898   : > { %2380 = vtanh.f32 %v1312_v47 }
 0x899   : > { %v1314_v13 = vpop.f32.mrf.mxu1 }
 0x89b   : > { %v2256_v14 = vpop.f32.mrf.mxu1 }
 0x8a5   : > { %v2381_v15 = vpop.eup %2380 }
 0x8a6   : > { %1717 = vst [vmem:[%s2954_s25 + $0x8] sm:$0xff] %v2381_v15  ;;  %v1320_v16 = vpack.c.bf16 %v2381_v15, %v2381_v15 }
 0x8a8   : > { %2274 = vmatmul.mubr.bf16.vlgmr.msra.gmra.mxu0 %v1320_v16 }
 0x8a9   : > { %2298 = vmatpush3.bf16.msra.mxu0 %v2858_v63  ;;  %2313 = vmatprep.mubr.msk.bf16.mxu0 %vm2413_vm0, %v2412_v17  ;;  %v1521_v63 = vld [vmem:[%s2732_s17 + $0x38] sm:$0xff] (%p2500_p5) }
 0x8aa   : > { %2299 = vmatprep.subr.bf16.mxu0 %v2412_v17  ;;  %1522 = vst [vmem:[%s1464_s28 + $0x70] sm:$0xff] (%p2500_p5), %v1521_v63 }
 0x8ad   : > { %2300 = vmatpush3.bf16.msra.mxu0 %v2864_v0 }
 0x8ae   : > { %2301 = vmatprep.subr.bf16.mxu0 %v2412_v17 }
 0x8b1   : > { %2302 = vmatpush3.bf16.msra.mxu0 %v2871_v30 }
 0x8b2   : > { %2303 = vmatprep.subr.bf16.mxu0 %v2412_v17 }
 0x8b5   : > { %2304 = vmatpush3.bf16.msra.mxu0 %v2889_v36 }
 0x8b6   : > { %2305 = vmatprep.subr.bf16.mxu0 %v2412_v17 }
 0x8b9   : > { %2306 = vmatpush3.bf16.msra.mxu0 %v2898_v44 }
 0x8ba   : > { %2307 = vmatprep.subr.bf16.mxu0 %v2412_v17 }
 0x8bd   : > { %2308 = vmatpush3.bf16.msra.mxu0 %v2907_v46 }
 0x8be   : > { %2309 = vmatprep.subr.bf16.mxu0 %v2412_v17 }
 0x8c1   : > { %2310 = vmatpush3.bf16.msra.mxu0 %v2916_v48 }
 0x8c2   : > { %2311 = vmatprep.subr.bf16.mxu0 %v2412_v17 }
 0x8c5   : > { %2312 = vmatpush3.bf16.msra.mxu0 %v2925_v50 }
 0x968   : > { %v1355_v49 = vpop.f32.mrf.mxu0 }
 0x969   : > { %v1356_v18 = vadd.f32 %v1355_v49, %v2764_v54 }
 0x96a   : > { %v2275_v19 = vpop.f32.mrf.mxu0 }
 0x96b   : > { %2382 = vtanh.f32 %v1356_v18 }
 0x96c   : > { %v1358_v20 = vpop.f32.mrf.mxu0 }
 0x96e   : > { %v2276_v21 = vpop.f32.mrf.mxu0 }
 0x978   : > { %v2383_v22 = vpop.eup %2382 }
 0x979   : > { %1718 = vst [vmem:[%s2954_s25 + $0x10] sm:$0xff] %v2383_v22  ;;  %v1364_v23 = vpack.c.bf16 %v2383_v22, %v2383_v22 }
 0x97b   : > { %2294 = vmatmul.mubr.bf16.vlgmr.msra.gmra.mxu1 %v1364_v23 }
 0xa3b   : > { %v1399_v24 = vpop.f32.mrf.mxu1 }
 0xa3c   : > { %v1400_v25 = vadd.f32 %v1399_v24, %v2767_v58  ;;  %v1507_v58 = vld [vmem:[%s2732_s17] sm:$0xff] (%p2500_p5) }
 0xa3d   : > { %v2295_v26 = vpop.f32.mrf.mxu1  ;;  %1508 = vst [vmem:[%s1464_s28] sm:$0xff] (%p2500_p5), %v1507_v58 }
 0xa3e   : > { %2384 = vtanh.f32 %v1400_v25 }
 0xa3f   : > { %v1402_v17 = vpop.f32.mrf.mxu1 }
 0xa41   : > { %v2296_v27 = vpop.f32.mrf.mxu1 }
 0xa4b   : > { %v2385_v28 = vpop.eup %2384 }
 0xa4c   : > { %1719 = vst [vmem:[%s2954_s25 + $0x18] sm:$0xff] %v2385_v28  ;;  %v1408_v54 = vpack.c.bf16 %v2385_v28, %v2385_v28 }
 0xa4e   : > { %2314 = vmatmul.mubr.bf16.vlgmr.msra.gmra.mxu0 %v1408_v54 }
 0xb0e   : > { %v1443_v29 = vpop.f32.mrf.mxu0 }
 0xb0f   : > { %v1444_v31 = vadd.f32 %v1443_v29, %v2770_v2  ;;  %v1509_v2 = vld [vmem:[%s2732_s17 + $0x8] sm:$0xff] (%p2500_p5) }
 0xb10   : > { %v2315_v33 = vpop.f32.mrf.mxu0  ;;  %1510 = vst [vmem:[%s1464_s28 + $0x10] sm:$0xff] (%p2500_p5), %v1509_v2 }
 0xb11   : > { %2386 = vtanh.f32 %v1444_v31 }
 0xb12   : > { %v1446_v35 = vpop.f32.mrf.mxu0 }
 0xb14   : > { %v2316_v51 = vpop.f32.mrf.mxu0 }
 0xb1b   : > { %1462 = sbr.rel (!%p2500_p5) target bundleno = 2848 (0xb20), region = 132 }
 0xb1e   : > { %v2387_v53 = vpop.eup %2386 }
 0xb1f   : > { %1720 = vst [vmem:[%s2954_s25 + $0x20] sm:$0xff] %v2387_v53 }
 0xb20 PF: > { %1528 = sbr.rel (!%p2500_p5) target bundleno = 2856 (0xb28), region = 170  ;;  %s1723_s29 = sshll.u32 (%p2500_p5), %s2481_s12, 3  ;;  %v1567_v0 = vld [vmem:[%s2954_s25] sm:$0xff] (%p2500_p5)  ;;  %v1569_v30 = vld [vmem:[%s2954_s25 + $0x8] sm:$0xff] (%p2500_p5)  ;;  %v1571_v37 = vld [vmem:[%s2954_s25 + $0x10] sm:$0xff] (%p2500_p5) }
 0xb21   : > { %s1530_s17 = scalar_lea.vmem (%p2500_p5), %s3043_s9, %s1723_s29  ;;  %v1573_v38 = vld [vmem:[%s2954_s25 + $0x18] sm:$0xff] (%p2500_p5) }
 0xb22   : > { %1568 = vst [vmem:[%s1530_s17] sm:$0xff] (%p2500_p5), %v1567_v0  ;;  %1570 = vst [vmem:[%s1530_s17 + $0x10] sm:$0xff] (%p2500_p5), %v1569_v30 }
 0xb23   : > { %1572 = vst [vmem:[%s1530_s17 + $0x20] sm:$0xff] (%p2500_p5), %v1571_v37  ;;  %1574 = vst [vmem:[%s1530_s17 + $0x30] sm:$0xff] (%p2500_p5), %v1573_v38 }
 0xb26   : > { %v1575_v39 = vld [vmem:[%s2954_s25 + $0x20] sm:$0xff] }
 0xb27   : > { %1576 = vst [vmem:[%s1530_s17 + $0x40] sm:$0xff] %v1575_v39 }
 0xb28 PF: > { %p17_p10 = scmp.ge.s32.totalorder %s2484_s13, 4   ;;  %s3046_s30 = smov %s2406_s10 }
 0xb29   : > { %s3047_s10 = smov %s2494_s16  ;;  %s3048_s11 = smov %s2484_s13 }
 0xb2a   :  { %19 = sbr.rel (!%p17_p10) target bundleno = 2 (0x2), region = 270 }

</bundles_post_ra>
